<compile_context>
chip_gen: v6e
topology: v6e:2x2x1
jax: 0.10.0
libtpu: 0.0.40
codegen_flags: <defaults>
</compile_context>

<pallas_src>
import jax
import jax.numpy as jnp
from jax.experimental import pallas as pl
from jax.experimental.pallas import tpu as pltpu

# (in_features, out_features) for every Linear, original PyTorch order.
_LAYER_DIMS = [
    (12, 32),     # pub1
    (32, 256),    # a1layer1
    (256, 512),   # a1layer2
    (512, 256),   # a1layer3
    (256, 64),    # a1layer4
    (32, 256),    # a2layer1
    (256, 556),   # a2layer2
    (556, 256),   # a2layer3
    (256, 192),   # a2layer4
    (256, 32),    # concat
    (32, 16),     # a3layer1
    (16, 2),      # a3layer2
]

_A2_PAD = 640  # 556 padded up to a multiple of 128


def ccv5_kernel(x_ref,
                w_pub, b_pub, w15, b15,
                w_a1l2, b_a1l2, w_a1l3, b_a1l3, w_a1l4, b_a1l4,
                w_a2l2, b_a2l2, w_a2l3, b_a2l3, w_a2l4, b_a2l4,
                w9a, w9b, b9,
                w_a3l1, b_a3l1, w_a3l2, b_a3l2,
                out_ref):
    def mm(h_bf16, w_ref):
        # bf16 x bf16 on the MXU, f32 accumulation. h is already bf16.
        return jnp.dot(h_bf16, w_ref[...], preferred_element_type=jnp.float32)

    def lin_relu(h_bf16, w_ref, b_ref):
        # bias add + ReLU in f32, then a single downcast; the next matmul
        # would cast to bf16 anyway, so this is bit-identical but the stored
        # intermediate (and any VMEM spill) is half the bytes.
        acc = mm(h_bf16, w_ref) + b_ref[...]
        return jnp.maximum(acc, 0.0).astype(jnp.bfloat16)

    x = x_ref[...]                                       # already bf16

    # shared trunk
    h = lin_relu(x, w_pub, b_pub)                        # (TB, 32)

    # fused branch entry: [a1layer1 | a2layer1] -> (TB, 512)
    h12 = lin_relu(h, w15, b15)
    a1 = h12[:, :256]                                    # lane-aligned split
    a2 = h12[:, 256:]

    # branch a1 (dropout p=0.3 -> identity in eval mode)
    a1 = lin_relu(a1, w_a1l2, b_a1l2)                    # (TB, 512)
    a1 = lin_relu(a1, w_a1l3, b_a1l3)                    # (TB, 256)
    a1 = lin_relu(a1, w_a1l4, b_a1l4)                    # (TB, 64)

    # Fold a1 into the concat-layer accumulator NOW, so only a (TB, 32) f32
    # value stays live across the heavy a2 branch (instead of (TB, 64) a1).
    c_acc = mm(a1, w9a)                                  # (TB, 32) f32

    # branch a2 (556 padded to 640 lanes; padded lanes are exact zeros)
    a2 = lin_relu(a2, w_a2l2, b_a2l2)                    # (TB, 640)
    a2 = lin_relu(a2, w_a2l3, b_a2l3)                    # (TB, 256)
    a2 = lin_relu(a2, w_a2l4, b_a2l4)                    # (TB, 192)

    # concat-layer without a concatenate: sum the two partial matmuls.
    c = jnp.maximum(c_acc + mm(a2, w9b) + b9[...], 0.0).astype(jnp.bfloat16)

    c = lin_relu(c, w_a3l1, b_a3l1)                      # (TB, 16)
    out_ref[...] = (mm(c, w_a3l2) + b_a3l2[...]).astype(out_ref.dtype)


def make_params(key):
    """Deterministic PyTorch-Linear-style init (uniform +/- 1/sqrt(fan_in)).

    Returns the *master* f32 params in the original layer order, each as a
    (weight (in, out), bias (1, out)) tuple.
    """
    params = []
    for (fan_in, fan_out) in _LAYER_DIMS:
        key, kw, kb = jax.random.split(key, 3)
        bound = 1.0 / (fan_in ** 0.5)
        w = jax.random.uniform(kw, (fan_in, fan_out), jnp.float32, -bound, bound)
        b = jax.random.uniform(kb, (1, fan_out), jnp.float32, -bound, bound)
        params.append((w, b))
    return params


def prepare_kernel_params(params):
    """Host-side transforms: fuse branch entries, pad 556->640, split concat
    weight, cast weights to bf16 (biases stay f32)."""
    (w_pub, b_pub), (w_a11, b_a11), (w_a12, b_a12), (w_a13, b_a13), \
        (w_a14, b_a14), (w_a21, b_a21), (w_a22, b_a22), (w_a23, b_a23), \
        (w_a24, b_a24), (w_cat, b_cat), (w_a31, b_a31), (w_a32, b_a32) = params

    bf16 = lambda a: a.astype(jnp.bfloat16)

    # Fuse a1layer1 and a2layer1: (32, 256) || (32, 256) -> (32, 512).
    w15 = jnp.concatenate([w_a11, w_a21], axis=1)
    b15 = jnp.concatenate([b_a11, b_a21], axis=1)

    # Zero-pad the 556-wide layer to 640 lanes.
    pad = _A2_PAD - 556
    w_a22p = jnp.pad(w_a22, ((0, 0), (0, pad)))
    b_a22p = jnp.pad(b_a22, ((0, 0), (0, pad)))
    # a2layer3: zero input *rows* kill the padded lanes; bias is unchanged
    # (its output width is 256, not 556).
    w_a23p = jnp.pad(w_a23, ((0, pad), (0, 0)))

    # Split the concat layer: rows 0..63 act on a1, rows 64..255 act on a2.
    w9a = w_cat[:64, :]
    w9b = w_cat[64:, :]

    return (
        bf16(w_pub), b_pub, bf16(w15), b15,
        bf16(w_a12), b_a12, bf16(w_a13), b_a13, bf16(w_a14), b_a14,
        bf16(w_a22p), b_a22p, bf16(w_a23p), b_a23, bf16(w_a24), b_a24,
        bf16(w9a), bf16(w9b), b_cat,
        bf16(w_a31), b_a31, bf16(w_a32), b_a32,
    )


def ccv5_forward(x, kernel_params, *, tb=1024):
    """Run the Pallas kernel over a batch-tiled 1-D grid.

    For B < tb the tile is shrunk to the real (sublane-padded) batch and a
    single grid step runs; for large B the batch is padded to a multiple of
    tb.  On v7x, >= 2 grid steps lets the "parallel" axis shard across the
    two TensorCores.
    """
    B, F = x.shape
    x = x.astype(jnp.bfloat16)               # halves input DMA; kernel wants bf16

    if B < tb:
        # Single grid step sized to the real batch (bf16 sublane pack = 16).
        tb_eff = max(16, ((B + 15) // 16) * 16)
        b_pad = tb_eff
    else:
        tb_eff = tb
        b_pad = ((B + tb - 1) // tb) * tb
    if b_pad != B:
        x = jnp.pad(x, ((0, b_pad - B), (0, 0)))
    grid = (b_pad // tb_eff,)

    def full_spec(a):
        # Full-array block; same block index every grid step -> stays in VMEM.
        return pl.BlockSpec(a.shape, lambda i: (0,) * a.ndim)

    in_specs = [pl.BlockSpec((tb_eff, F), lambda i: (i, 0))]
    in_specs += [full_spec(p) for p in kernel_params]
    out_spec = pl.BlockSpec((tb_eff, 2), lambda i: (i, 0))

    out = pl.pallas_call(
        ccv5_kernel,
        out_shape=jax.ShapeDtypeStruct((b_pad, 2), jnp.float32),
        grid=grid,
        in_specs=in_specs,
        out_specs=out_spec,
        compiler_params=pltpu.CompilerParams(
            dimension_semantics=("parallel",),
            vmem_limit_bytes=32 << 20,
        ),
    )(x, *kernel_params)
    return out[:B]


def ccv5_reference(x, params):
    """Pure-JAX reference with the original structure (concat, unfused,
    unpadded) but the same bf16-weight / f32-accumulate matmul math."""
    (w_pub, b_pub), (w_a11, b_a11), (w_a12, b_a12), (w_a13, b_a13), \
        (w_a14, b_a14), (w_a21, b_a21), (w_a22, b_a22), (w_a23, b_a23), \
        (w_a24, b_a24), (w_cat, b_cat), (w_a31, b_a31), (w_a32, b_a32) = params

    def lin(h, w, b):
        return jnp.dot(h.astype(jnp.bfloat16), w.astype(jnp.bfloat16),
                       preferred_element_type=jnp.float32) + b

    relu = lambda v: jnp.maximum(v, 0.0)

    h = relu(lin(x, w_pub, b_pub))
    a1 = relu(lin(h, w_a11, b_a11))
    a1 = relu(lin(a1, w_a12, b_a12))
    a1 = relu(lin(a1, w_a13, b_a13))
    a1 = relu(lin(a1, w_a14, b_a14))
    a2 = relu(lin(h, w_a21, b_a21))
    a2 = relu(lin(a2, w_a22, b_a22))
    a2 = relu(lin(a2, w_a23, b_a23))
    a2 = relu(lin(a2, w_a24, b_a24))
    cat = jnp.concatenate([a1, a2], axis=1)
    c = relu(lin(cat, w_cat, b_cat))
    c = relu(lin(c, w_a31, b_a31))
    return lin(c, w_a32, b_a32)


if __name__ == "__main__":
    key = jax.random.PRNGKey(0)
    key, kx = jax.random.split(key)
    B = 8
    x = jax.random.normal(kx, (B, 12), jnp.float32)

    params = make_params(key)                      # f32 master params
    kernel_params = prepare_kernel_params(params)  # fused/padded/split, bf16 W

    out = ccv5_forward(x, kernel_params)
    out = jax.block_until_ready(out)

    ref = ccv5_reference(x, params)
    assert out.shape == (B, 2), out.shape
    assert jnp.allclose(out, ref, atol=2e-3, rtol=2e-3), (
        float(jnp.max(jnp.abs(out - ref))))

    print("KERNEL_OK")
</pallas_src>

<mosaic_0001>
module attributes {stable_mosaic.version = 11 : i64} {
  func.func @ccv5_kernel(%arg0: i32, %arg1: memref<16x12xbf16, #tpu.memory_space<vmem>>, %arg2: memref<12x32xbf16, #tpu.memory_space<vmem>>, %arg3: memref<1x32xf32, #tpu.memory_space<vmem>>, %arg4: memref<32x512xbf16, #tpu.memory_space<vmem>>, %arg5: memref<1x512xf32, #tpu.memory_space<vmem>>, %arg6: memref<256x512xbf16, #tpu.memory_space<vmem>>, %arg7: memref<1x512xf32, #tpu.memory_space<vmem>>, %arg8: memref<512x256xbf16, #tpu.memory_space<vmem>>, %arg9: memref<1x256xf32, #tpu.memory_space<vmem>>, %arg10: memref<256x64xbf16, #tpu.memory_space<vmem>>, %arg11: memref<1x64xf32, #tpu.memory_space<vmem>>, %arg12: memref<256x640xbf16, #tpu.memory_space<vmem>>, %arg13: memref<1x640xf32, #tpu.memory_space<vmem>>, %arg14: memref<640x256xbf16, #tpu.memory_space<vmem>>, %arg15: memref<1x256xf32, #tpu.memory_space<vmem>>, %arg16: memref<256x192xbf16, #tpu.memory_space<vmem>>, %arg17: memref<1x192xf32, #tpu.memory_space<vmem>>, %arg18: memref<64x32xbf16, #tpu.memory_space<vmem>>, %arg19: memref<192x32xbf16, #tpu.memory_space<vmem>>, %arg20: memref<1x32xf32, #tpu.memory_space<vmem>>, %arg21: memref<32x16xbf16, #tpu.memory_space<vmem>>, %arg22: memref<1x16xf32, #tpu.memory_space<vmem>>, %arg23: memref<16x2xbf16, #tpu.memory_space<vmem>>, %arg24: memref<1x2xf32, #tpu.memory_space<vmem>>, %arg25: memref<16x2xf32, #tpu.memory_space<vmem>>) attributes {dimension_semantics = [#tpu.dimension_semantics<parallel>], iteration_bounds = array<i64: 1>, scalar_prefetch = 0 : i64, scratch_operands = 0 : i64, tpu.core_type = #tpu.core_type<tc>, window_params = [{transform_indices = @transform_0, window_bounds = array<i64: 16, 12>}, {pipeline_mode = #tpu.pipeline_mode<synchronous>, transform_indices = @transform_1, window_bounds = array<i64: 12, 32>}, {pipeline_mode = #tpu.pipeline_mode<synchronous>, transform_indices = @transform_2, window_bounds = array<i64: 1, 32>}, {pipeline_mode = #tpu.pipeline_mode<synchronous>, transform_indices = @transform_3, window_bounds = array<i64: 32, 512>}, {pipeline_mode = #tpu.pipeline_mode<synchronous>, transform_indices = @transform_4, window_bounds = array<i64: 1, 512>}, {pipeline_mode = #tpu.pipeline_mode<synchronous>, transform_indices = @transform_5, window_bounds = array<i64: 256, 512>}, {pipeline_mode = #tpu.pipeline_mode<synchronous>, transform_indices = @transform_6, window_bounds = array<i64: 1, 512>}, {pipeline_mode = #tpu.pipeline_mode<synchronous>, transform_indices = @transform_7, window_bounds = array<i64: 512, 256>}, {pipeline_mode = #tpu.pipeline_mode<synchronous>, transform_indices = @transform_8, window_bounds = array<i64: 1, 256>}, {pipeline_mode = #tpu.pipeline_mode<synchronous>, transform_indices = @transform_9, window_bounds = array<i64: 256, 64>}, {pipeline_mode = #tpu.pipeline_mode<synchronous>, transform_indices = @transform_10, window_bounds = array<i64: 1, 64>}, {pipeline_mode = #tpu.pipeline_mode<synchronous>, transform_indices = @transform_11, window_bounds = array<i64: 256, 640>}, {pipeline_mode = #tpu.pipeline_mode<synchronous>, transform_indices = @transform_12, window_bounds = array<i64: 1, 640>}, {pipeline_mode = #tpu.pipeline_mode<synchronous>, transform_indices = @transform_13, window_bounds = array<i64: 640, 256>}, {pipeline_mode = #tpu.pipeline_mode<synchronous>, transform_indices = @transform_14, window_bounds = array<i64: 1, 256>}, {pipeline_mode = #tpu.pipeline_mode<synchronous>, transform_indices = @transform_15, window_bounds = array<i64: 256, 192>}, {pipeline_mode = #tpu.pipeline_mode<synchronous>, transform_indices = @transform_16, window_bounds = array<i64: 1, 192>}, {pipeline_mode = #tpu.pipeline_mode<synchronous>, transform_indices = @transform_17, window_bounds = array<i64: 64, 32>}, {pipeline_mode = #tpu.pipeline_mode<synchronous>, transform_indices = @transform_18, window_bounds = array<i64: 192, 32>}, {pipeline_mode = #tpu.pipeline_mode<synchronous>, transform_indices = @transform_19, window_bounds = array<i64: 1, 32>}, {pipeline_mode = #tpu.pipeline_mode<synchronous>, transform_indices = @transform_20, window_bounds = array<i64: 32, 16>}, {pipeline_mode = #tpu.pipeline_mode<synchronous>, transform_indices = @transform_21, window_bounds = array<i64: 1, 16>}, {pipeline_mode = #tpu.pipeline_mode<synchronous>, transform_indices = @transform_22, window_bounds = array<i64: 16, 2>}, {pipeline_mode = #tpu.pipeline_mode<synchronous>, transform_indices = @transform_23, window_bounds = array<i64: 1, 2>}, {transform_indices = @transform_24, window_bounds = array<i64: 16, 2>}]} {
    %c0 = arith.constant 0 : index
    %c0_0 = arith.constant 0 : index
    %0 = vector.load %arg1[%c0, %c0_0] : memref<16x12xbf16, #tpu.memory_space<vmem>>, vector<16x12xbf16>
    %c0_1 = arith.constant 0 : index
    %c0_2 = arith.constant 0 : index
    %1 = vector.load %arg2[%c0_1, %c0_2] : memref<12x32xbf16, #tpu.memory_space<vmem>>, vector<12x32xbf16>
    %cst = arith.constant dense<0.000000e+00> : vector<16x32xf32>
    %2 = tpu.matmul %0, %1, %cst {dimension_numbers = #tpu.dot_dimension_numbers<[1], [0], [0], [1], [0, 0, 1, 1], [], []>} : vector<16x12xbf16>, vector<12x32xbf16>, vector<16x32xf32> -> vector<16x32xf32>
    %c0_3 = arith.constant 0 : index
    %c0_4 = arith.constant 0 : index
    %3 = vector.load %arg3[%c0_3, %c0_4] : memref<1x32xf32, #tpu.memory_space<vmem>>, vector<1x32xf32>
    %4 = vector.broadcast %3 : vector<1x32xf32> to vector<16x32xf32>
    %5 = arith.addf %2, %4 : vector<16x32xf32>
    %cst_5 = arith.constant 0.000000e+00 : f32
    %6 = vector.broadcast %cst_5 : f32 to vector<16x32xf32>
    %7 = arith.maximumf %5, %6 : vector<16x32xf32>
    %8 = arith.truncf %7 : vector<16x32xf32> to vector<16x32xbf16>
    %c0_6 = arith.constant 0 : index
    %c0_7 = arith.constant 0 : index
    %9 = vector.load %arg4[%c0_6, %c0_7] : memref<32x512xbf16, #tpu.memory_space<vmem>>, vector<32x512xbf16>
    %cst_8 = arith.constant dense<0.000000e+00> : vector<16x512xf32>
    %10 = tpu.matmul %8, %9, %cst_8 {dimension_numbers = #tpu.dot_dimension_numbers<[1], [0], [0], [1], [0, 0, 1, 1], [], []>} : vector<16x32xbf16>, vector<32x512xbf16>, vector<16x512xf32> -> vector<16x512xf32>
    %c0_9 = arith.constant 0 : index
    %c0_10 = arith.constant 0 : index
    %11 = vector.load %arg5[%c0_9, %c0_10] : memref<1x512xf32, #tpu.memory_space<vmem>>, vector<1x512xf32>
    %12 = vector.broadcast %11 : vector<1x512xf32> to vector<16x512xf32>
    %13 = arith.addf %10, %12 : vector<16x512xf32>
    %cst_11 = arith.constant 0.000000e+00 : f32
    %14 = vector.broadcast %cst_11 : f32 to vector<16x512xf32>
    %15 = arith.maximumf %13, %14 : vector<16x512xf32>
    %16 = arith.truncf %15 : vector<16x512xf32> to vector<16x512xbf16>
    %17 = vector.extract_strided_slice %16 {offsets = [0, 0], sizes = [16, 256], strides = [1, 1]} : vector<16x512xbf16> to vector<16x256xbf16>
    %18 = vector.extract_strided_slice %16 {offsets = [0, 256], sizes = [16, 256], strides = [1, 1]} : vector<16x512xbf16> to vector<16x256xbf16>
    %c0_12 = arith.constant 0 : index
    %c0_13 = arith.constant 0 : index
    %19 = vector.load %arg6[%c0_12, %c0_13] : memref<256x512xbf16, #tpu.memory_space<vmem>>, vector<256x512xbf16>
    %cst_14 = arith.constant dense<0.000000e+00> : vector<16x512xf32>
    %20 = tpu.matmul %17, %19, %cst_14 {dimension_numbers = #tpu.dot_dimension_numbers<[1], [0], [0], [1], [0, 0, 1, 1], [], []>} : vector<16x256xbf16>, vector<256x512xbf16>, vector<16x512xf32> -> vector<16x512xf32>
    %c0_15 = arith.constant 0 : index
    %c0_16 = arith.constant 0 : index
    %21 = vector.load %arg7[%c0_15, %c0_16] : memref<1x512xf32, #tpu.memory_space<vmem>>, vector<1x512xf32>
    %22 = vector.broadcast %21 : vector<1x512xf32> to vector<16x512xf32>
    %23 = arith.addf %20, %22 : vector<16x512xf32>
    %cst_17 = arith.constant 0.000000e+00 : f32
    %24 = vector.broadcast %cst_17 : f32 to vector<16x512xf32>
    %25 = arith.maximumf %23, %24 : vector<16x512xf32>
    %26 = arith.truncf %25 : vector<16x512xf32> to vector<16x512xbf16>
    %c0_18 = arith.constant 0 : index
    %c0_19 = arith.constant 0 : index
    %27 = vector.load %arg8[%c0_18, %c0_19] : memref<512x256xbf16, #tpu.memory_space<vmem>>, vector<512x256xbf16>
    %cst_20 = arith.constant dense<0.000000e+00> : vector<16x256xf32>
    %28 = tpu.matmul %26, %27, %cst_20 {dimension_numbers = #tpu.dot_dimension_numbers<[1], [0], [0], [1], [0, 0, 1, 1], [], []>} : vector<16x512xbf16>, vector<512x256xbf16>, vector<16x256xf32> -> vector<16x256xf32>
    %c0_21 = arith.constant 0 : index
    %c0_22 = arith.constant 0 : index
    %29 = vector.load %arg9[%c0_21, %c0_22] : memref<1x256xf32, #tpu.memory_space<vmem>>, vector<1x256xf32>
    %30 = vector.broadcast %29 : vector<1x256xf32> to vector<16x256xf32>
    %31 = arith.addf %28, %30 : vector<16x256xf32>
    %cst_23 = arith.constant 0.000000e+00 : f32
    %32 = vector.broadcast %cst_23 : f32 to vector<16x256xf32>
    %33 = arith.maximumf %31, %32 : vector<16x256xf32>
    %34 = arith.truncf %33 : vector<16x256xf32> to vector<16x256xbf16>
    %c0_24 = arith.constant 0 : index
    %c0_25 = arith.constant 0 : index
    %35 = vector.load %arg10[%c0_24, %c0_25] : memref<256x64xbf16, #tpu.memory_space<vmem>>, vector<256x64xbf16>
    %cst_26 = arith.constant dense<0.000000e+00> : vector<16x64xf32>
    %36 = tpu.matmul %34, %35, %cst_26 {dimension_numbers = #tpu.dot_dimension_numbers<[1], [0], [0], [1], [0, 0, 1, 1], [], []>} : vector<16x256xbf16>, vector<256x64xbf16>, vector<16x64xf32> -> vector<16x64xf32>
    %c0_27 = arith.constant 0 : index
    %c0_28 = arith.constant 0 : index
    %37 = vector.load %arg11[%c0_27, %c0_28] : memref<1x64xf32, #tpu.memory_space<vmem>>, vector<1x64xf32>
    %38 = vector.broadcast %37 : vector<1x64xf32> to vector<16x64xf32>
    %39 = arith.addf %36, %38 : vector<16x64xf32>
    %cst_29 = arith.constant 0.000000e+00 : f32
    %40 = vector.broadcast %cst_29 : f32 to vector<16x64xf32>
    %41 = arith.maximumf %39, %40 : vector<16x64xf32>
    %42 = arith.truncf %41 : vector<16x64xf32> to vector<16x64xbf16>
    %c0_30 = arith.constant 0 : index
    %c0_31 = arith.constant 0 : index
    %43 = vector.load %arg18[%c0_30, %c0_31] : memref<64x32xbf16, #tpu.memory_space<vmem>>, vector<64x32xbf16>
    %cst_32 = arith.constant dense<0.000000e+00> : vector<16x32xf32>
    %44 = tpu.matmul %42, %43, %cst_32 {dimension_numbers = #tpu.dot_dimension_numbers<[1], [0], [0], [1], [0, 0, 1, 1], [], []>} : vector<16x64xbf16>, vector<64x32xbf16>, vector<16x32xf32> -> vector<16x32xf32>
    %c0_33 = arith.constant 0 : index
    %c0_34 = arith.constant 0 : index
    %45 = vector.load %arg12[%c0_33, %c0_34] : memref<256x640xbf16, #tpu.memory_space<vmem>>, vector<256x640xbf16>
    %cst_35 = arith.constant dense<0.000000e+00> : vector<16x640xf32>
    %46 = tpu.matmul %18, %45, %cst_35 {dimension_numbers = #tpu.dot_dimension_numbers<[1], [0], [0], [1], [0, 0, 1, 1], [], []>} : vector<16x256xbf16>, vector<256x640xbf16>, vector<16x640xf32> -> vector<16x640xf32>
    %c0_36 = arith.constant 0 : index
    %c0_37 = arith.constant 0 : index
    %47 = vector.load %arg13[%c0_36, %c0_37] : memref<1x640xf32, #tpu.memory_space<vmem>>, vector<1x640xf32>
    %48 = vector.broadcast %47 : vector<1x640xf32> to vector<16x640xf32>
    %49 = arith.addf %46, %48 : vector<16x640xf32>
    %cst_38 = arith.constant 0.000000e+00 : f32
    %50 = vector.broadcast %cst_38 : f32 to vector<16x640xf32>
    %51 = arith.maximumf %49, %50 : vector<16x640xf32>
    %52 = arith.truncf %51 : vector<16x640xf32> to vector<16x640xbf16>
    %c0_39 = arith.constant 0 : index
    %c0_40 = arith.constant 0 : index
    %53 = vector.load %arg14[%c0_39, %c0_40] : memref<640x256xbf16, #tpu.memory_space<vmem>>, vector<640x256xbf16>
    %cst_41 = arith.constant dense<0.000000e+00> : vector<16x256xf32>
    %54 = tpu.matmul %52, %53, %cst_41 {dimension_numbers = #tpu.dot_dimension_numbers<[1], [0], [0], [1], [0, 0, 1, 1], [], []>} : vector<16x640xbf16>, vector<640x256xbf16>, vector<16x256xf32> -> vector<16x256xf32>
    %c0_42 = arith.constant 0 : index
    %c0_43 = arith.constant 0 : index
    %55 = vector.load %arg15[%c0_42, %c0_43] : memref<1x256xf32, #tpu.memory_space<vmem>>, vector<1x256xf32>
    %56 = vector.broadcast %55 : vector<1x256xf32> to vector<16x256xf32>
    %57 = arith.addf %54, %56 : vector<16x256xf32>
    %cst_44 = arith.constant 0.000000e+00 : f32
    %58 = vector.broadcast %cst_44 : f32 to vector<16x256xf32>
    %59 = arith.maximumf %57, %58 : vector<16x256xf32>
    %60 = arith.truncf %59 : vector<16x256xf32> to vector<16x256xbf16>
    %c0_45 = arith.constant 0 : index
    %c0_46 = arith.constant 0 : index
    %61 = vector.load %arg16[%c0_45, %c0_46] : memref<256x192xbf16, #tpu.memory_space<vmem>>, vector<256x192xbf16>
    %cst_47 = arith.constant dense<0.000000e+00> : vector<16x192xf32>
    %62 = tpu.matmul %60, %61, %cst_47 {dimension_numbers = #tpu.dot_dimension_numbers<[1], [0], [0], [1], [0, 0, 1, 1], [], []>} : vector<16x256xbf16>, vector<256x192xbf16>, vector<16x192xf32> -> vector<16x192xf32>
    %c0_48 = arith.constant 0 : index
    %c0_49 = arith.constant 0 : index
    %63 = vector.load %arg17[%c0_48, %c0_49] : memref<1x192xf32, #tpu.memory_space<vmem>>, vector<1x192xf32>
    %64 = vector.broadcast %63 : vector<1x192xf32> to vector<16x192xf32>
    %65 = arith.addf %62, %64 : vector<16x192xf32>
    %cst_50 = arith.constant 0.000000e+00 : f32
    %66 = vector.broadcast %cst_50 : f32 to vector<16x192xf32>
    %67 = arith.maximumf %65, %66 : vector<16x192xf32>
    %68 = arith.truncf %67 : vector<16x192xf32> to vector<16x192xbf16>
    %c0_51 = arith.constant 0 : index
    %c0_52 = arith.constant 0 : index
    %69 = vector.load %arg19[%c0_51, %c0_52] : memref<192x32xbf16, #tpu.memory_space<vmem>>, vector<192x32xbf16>
    %cst_53 = arith.constant dense<0.000000e+00> : vector<16x32xf32>
    %70 = tpu.matmul %68, %69, %cst_53 {dimension_numbers = #tpu.dot_dimension_numbers<[1], [0], [0], [1], [0, 0, 1, 1], [], []>} : vector<16x192xbf16>, vector<192x32xbf16>, vector<16x32xf32> -> vector<16x32xf32>
    %71 = arith.addf %44, %70 : vector<16x32xf32>
    %c0_54 = arith.constant 0 : index
    %c0_55 = arith.constant 0 : index
    %72 = vector.load %arg20[%c0_54, %c0_55] : memref<1x32xf32, #tpu.memory_space<vmem>>, vector<1x32xf32>
    %73 = vector.broadcast %72 : vector<1x32xf32> to vector<16x32xf32>
    %74 = arith.addf %71, %73 : vector<16x32xf32>
    %cst_56 = arith.constant 0.000000e+00 : f32
    %75 = vector.broadcast %cst_56 : f32 to vector<16x32xf32>
    %76 = arith.maximumf %74, %75 : vector<16x32xf32>
    %77 = arith.truncf %76 : vector<16x32xf32> to vector<16x32xbf16>
    %c0_57 = arith.constant 0 : index
    %c0_58 = arith.constant 0 : index
    %78 = vector.load %arg21[%c0_57, %c0_58] : memref<32x16xbf16, #tpu.memory_space<vmem>>, vector<32x16xbf16>
    %cst_59 = arith.constant dense<0.000000e+00> : vector<16x16xf32>
    %79 = tpu.matmul %77, %78, %cst_59 {dimension_numbers = #tpu.dot_dimension_numbers<[1], [0], [0], [1], [0, 0, 1, 1], [], []>} : vector<16x32xbf16>, vector<32x16xbf16>, vector<16x16xf32> -> vector<16x16xf32>
    %c0_60 = arith.constant 0 : index
    %c0_61 = arith.constant 0 : index
    %80 = vector.load %arg22[%c0_60, %c0_61] : memref<1x16xf32, #tpu.memory_space<vmem>>, vector<1x16xf32>
    %81 = vector.broadcast %80 : vector<1x16xf32> to vector<16x16xf32>
    %82 = arith.addf %79, %81 : vector<16x16xf32>
    %cst_62 = arith.constant 0.000000e+00 : f32
    %83 = vector.broadcast %cst_62 : f32 to vector<16x16xf32>
    %84 = arith.maximumf %82, %83 : vector<16x16xf32>
    %85 = arith.truncf %84 : vector<16x16xf32> to vector<16x16xbf16>
    %c0_63 = arith.constant 0 : index
    %c0_64 = arith.constant 0 : index
    %86 = vector.load %arg23[%c0_63, %c0_64] : memref<16x2xbf16, #tpu.memory_space<vmem>>, vector<16x2xbf16>
    %cst_65 = arith.constant dense<0.000000e+00> : vector<16x2xf32>
    %87 = tpu.matmul %85, %86, %cst_65 {dimension_numbers = #tpu.dot_dimension_numbers<[1], [0], [0], [1], [0, 0, 1, 1], [], []>} : vector<16x16xbf16>, vector<16x2xbf16>, vector<16x2xf32> -> vector<16x2xf32>
    %c0_66 = arith.constant 0 : index
    %c0_67 = arith.constant 0 : index
    %88 = vector.load %arg24[%c0_66, %c0_67] : memref<1x2xf32, #tpu.memory_space<vmem>>, vector<1x2xf32>
    %89 = vector.broadcast %88 : vector<1x2xf32> to vector<16x2xf32>
    %90 = arith.addf %87, %89 : vector<16x2xf32>
    %c0_68 = arith.constant 0 : index
    %c0_69 = arith.constant 0 : index
    %91 = vector.load %arg25[%c0_68, %c0_69] : memref<16x2xf32, #tpu.memory_space<vmem>>, vector<16x2xf32>
    tpu.vector_store %arg25[%c0_68, %c0_69], %90 {strides = array<i32>} : memref<16x2xf32, #tpu.memory_space<vmem>>, vector<16x2xf32>,
    return
  }
  func.func @transform_0(%arg0: i32) -> (i32, i32) {
    %c0_i32 = arith.constant 0 : i32
    %c0_i32_0 = arith.constant 0 : i32
    return %arg0, %c0_i32 : i32, i32
  }
  func.func @transform_1(%arg0: i32) -> (i32, i32) {
    %c0_i32 = arith.constant 0 : i32
    %c0_i32_0 = arith.constant 0 : i32
    %c0_i32_1 = arith.constant 0 : i32
    return %c0_i32, %c0_i32_0 : i32, i32
  }
  func.func @transform_2(%arg0: i32) -> (i32, i32) {
    %c0_i32 = arith.constant 0 : i32
    %c0_i32_0 = arith.constant 0 : i32
    %c0_i32_1 = arith.constant 0 : i32
    return %c0_i32, %c0_i32_0 : i32, i32
  }
  func.func @transform_3(%arg0: i32) -> (i32, i32) {
    %c0_i32 = arith.constant 0 : i32
    %c0_i32_0 = arith.constant 0 : i32
    %c0_i32_1 = arith.constant 0 : i32
    return %c0_i32, %c0_i32_0 : i32, i32
  }
  func.func @transform_4(%arg0: i32) -> (i32, i32) {
    %c0_i32 = arith.constant 0 : i32
    %c0_i32_0 = arith.constant 0 : i32
    %c0_i32_1 = arith.constant 0 : i32
    return %c0_i32, %c0_i32_0 : i32, i32
  }
  func.func @transform_5(%arg0: i32) -> (i32, i32) {
    %c0_i32 = arith.constant 0 : i32
    %c0_i32_0 = arith.constant 0 : i32
    %c0_i32_1 = arith.constant 0 : i32
    return %c0_i32, %c0_i32_0 : i32, i32
  }
  func.func @transform_6(%arg0: i32) -> (i32, i32) {
    %c0_i32 = arith.constant 0 : i32
    %c0_i32_0 = arith.constant 0 : i32
    %c0_i32_1 = arith.constant 0 : i32
    return %c0_i32, %c0_i32_0 : i32, i32
  }
  func.func @transform_7(%arg0: i32) -> (i32, i32) {
    %c0_i32 = arith.constant 0 : i32
    %c0_i32_0 = arith.constant 0 : i32
    %c0_i32_1 = arith.constant 0 : i32
    return %c0_i32, %c0_i32_0 : i32, i32
  }
  func.func @transform_8(%arg0: i32) -> (i32, i32) {
    %c0_i32 = arith.constant 0 : i32
    %c0_i32_0 = arith.constant 0 : i32
    %c0_i32_1 = arith.constant 0 : i32
    return %c0_i32, %c0_i32_0 : i32, i32
  }
  func.func @transform_9(%arg0: i32) -> (i32, i32) {
    %c0_i32 = arith.constant 0 : i32
    %c0_i32_0 = arith.constant 0 : i32
    %c0_i32_1 = arith.constant 0 : i32
    return %c0_i32, %c0_i32_0 : i32, i32
  }
  func.func @transform_10(%arg0: i32) -> (i32, i32) {
    %c0_i32 = arith.constant 0 : i32
    %c0_i32_0 = arith.constant 0 : i32
    %c0_i32_1 = arith.constant 0 : i32
    return %c0_i32, %c0_i32_0 : i32, i32
  }
  func.func @transform_11(%arg0: i32) -> (i32, i32) {
    %c0_i32 = arith.constant 0 : i32
    %c0_i32_0 = arith.constant 0 : i32
    %c0_i32_1 = arith.constant 0 : i32
    return %c0_i32, %c0_i32_0 : i32, i32
  }
  func.func @transform_12(%arg0: i32) -> (i32, i32) {
    %c0_i32 = arith.constant 0 : i32
    %c0_i32_0 = arith.constant 0 : i32
    %c0_i32_1 = arith.constant 0 : i32
    return %c0_i32, %c0_i32_0 : i32, i32
  }
  func.func @transform_13(%arg0: i32) -> (i32, i32) {
    %c0_i32 = arith.constant 0 : i32
    %c0_i32_0 = arith.constant 0 : i32
    %c0_i32_1 = arith.constant 0 : i32
    return %c0_i32, %c0_i32_0 : i32, i32
  }
  func.func @transform_14(%arg0: i32) -> (i32, i32) {
    %c0_i32 = arith.constant 0 : i32
    %c0_i32_0 = arith.constant 0 : i32
    %c0_i32_1 = arith.constant 0 : i32
    return %c0_i32, %c0_i32_0 : i32, i32
  }
  func.func @transform_15(%arg0: i32) -> (i32, i32) {
    %c0_i32 = arith.constant 0 : i32
    %c0_i32_0 = arith.constant 0 : i32
    %c0_i32_1 = arith.constant 0 : i32
    return %c0_i32, %c0_i32_0 : i32, i32
  }
  func.func @transform_16(%arg0: i32) -> (i32, i32) {
    %c0_i32 = arith.constant 0 : i32
    %c0_i32_0 = arith.constant 0 : i32
    %c0_i32_1 = arith.constant 0 : i32
    return %c0_i32, %c0_i32_0 : i32, i32
  }
  func.func @transform_17(%arg0: i32) -> (i32, i32) {
    %c0_i32 = arith.constant 0 : i32
    %c0_i32_0 = arith.constant 0 : i32
    %c0_i32_1 = arith.constant 0 : i32
    return %c0_i32, %c0_i32_0 : i32, i32
  }
  func.func @transform_18(%arg0: i32) -> (i32, i32) {
    %c0_i32 = arith.constant 0 : i32
    %c0_i32_0 = arith.constant 0 : i32
    %c0_i32_1 = arith.constant 0 : i32
    return %c0_i32, %c0_i32_0 : i32, i32
  }
  func.func @transform_19(%arg0: i32) -> (i32, i32) {
    %c0_i32 = arith.constant 0 : i32
    %c0_i32_0 = arith.constant 0 : i32
    %c0_i32_1 = arith.constant 0 : i32
    return %c0_i32, %c0_i32_0 : i32, i32
  }
  func.func @transform_20(%arg0: i32) -> (i32, i32) {
    %c0_i32 = arith.constant 0 : i32
    %c0_i32_0 = arith.constant 0 : i32
    %c0_i32_1 = arith.constant 0 : i32
    return %c0_i32, %c0_i32_0 : i32, i32
  }
  func.func @transform_21(%arg0: i32) -> (i32, i32) {
    %c0_i32 = arith.constant 0 : i32
    %c0_i32_0 = arith.constant 0 : i32
    %c0_i32_1 = arith.constant 0 : i32
    return %c0_i32, %c0_i32_0 : i32, i32
  }
  func.func @transform_22(%arg0: i32) -> (i32, i32) {
    %c0_i32 = arith.constant 0 : i32
    %c0_i32_0 = arith.constant 0 : i32
    %c0_i32_1 = arith.constant 0 : i32
    return %c0_i32, %c0_i32_0 : i32, i32
  }
  func.func @transform_23(%arg0: i32) -> (i32, i32) {
    %c0_i32 = arith.constant 0 : i32
    %c0_i32_0 = arith.constant 0 : i32
    %c0_i32_1 = arith.constant 0 : i32
    return %c0_i32, %c0_i32_0 : i32, i32
  }
  func.func @transform_24(%arg0: i32) -> (i32, i32) {
    %c0_i32 = arith.constant 0 : i32
    %c0_i32_0 = arith.constant 0 : i32
    return %arg0, %c0_i32 : i32, i32
  }
}

</mosaic_0001>

<bundles_post_ra>
// kernel: tpu_custom_call.1
= control target key start
LH: loop header
LB: loop body
LE: loop exit
PB: predicated region body
PF: predicated region fallthrough
CT: control target
= control target key end

     0   :  { %s5694_s0 = inlined_call_operand.hbm [shape: bf16[16,12], index: 0, kind: input, shape index: {}]   ;;  %s5695_s1 = inlined_call_operand.hbm [shape: bf16[12,32], index: 1, kind: input, shape index: {}]   ;;  %s5696_s2 = inlined_call_operand.hbm [shape: f32[1,32], index: 2, kind: input, shape index: {}]   ;;  %s5697_s3 = inlined_call_operand.hbm [shape: bf16[32,512], index: 3, kind: input, shape index: {}]   ;;  %s5698_s4 = inlined_call_operand.hbm [shape: f32[1,512], index: 4, kind: input, shape index: {}]   ;;  %s5699_s5 = inlined_call_operand.hbm [shape: bf16[256,512], index: 5, kind: input, shape index: {}]   ;;  %s5700_s6 = inlined_call_operand.hbm [shape: f32[1,512], index: 6, kind: input, shape index: {}]   ;;  %s5701_s7 = inlined_call_operand.hbm [shape: bf16[512,256], index: 7, kind: input, shape index: {}]   ;;  %s5702_s8 = inlined_call_operand.hbm [shape: f32[1,256], index: 8, kind: input, shape index: {}]   ;;  %s5703_s9 = inlined_call_operand.vmem [shape: bf16[256,64], index: 9, kind: input, shape index: {}]   ;;  %s5704_s10 = inlined_call_operand.hbm [shape: f32[1,64], index: 10, kind: input, shape index: {}]   ;;  %s5705_s11 = inlined_call_operand.vmem [shape: bf16[256,640], index: 11, kind: input, shape index: {}]   ;;  %s5706_s12 = inlined_call_operand.hbm [shape: f32[1,640], index: 12, kind: input, shape index: {}]   ;;  %s5707_s13 = inlined_call_operand.hbm [shape: bf16[640,256], index: 13, kind: input, shape index: {}]   ;;  %s5708_s14 = inlined_call_operand.hbm [shape: f32[1,256], index: 14, kind: input, shape index: {}]   ;;  %s5709_s15 = inlined_call_operand.vmem [shape: bf16[256,192], index: 15, kind: input, shape index: {}]   ;;  %s5710_s16 = inlined_call_operand.hbm [shape: f32[1,192], index: 16, kind: input, shape index: {}]   ;;  %s5711_s17 = inlined_call_operand.vmem [shape: bf16[64,32], index: 17, kind: input, shape index: {}]   ;;  %s5712_s18 = inlined_call_operand.vmem [shape: bf16[192,32], index: 18, kind: input, shape index: {}]   ;;  %s5713_s19 = inlined_call_operand.hbm [shape: f32[1,32], index: 19, kind: input, shape index: {}]   ;;  %s5714_s20 = inlined_call_operand.vmem [shape: bf16[32,16], index: 20, kind: input, shape index: {}]   ;;  %s5715_s21 = inlined_call_operand.vmem [shape: f32[1,16], index: 21, kind: input, shape index: {}]   ;;  %s5716_s22 = inlined_call_operand.vmem [shape: bf16[16,2], index: 22, kind: input, shape index: {}]   ;;  %s5717_s23 = inlined_call_operand.vmem [shape: f32[1,2], index: 23, kind: input, shape index: {}]   ;;  %s5718_s24 = inlined_call_operand.vmem [shape: f32[16,2], index: 24, kind: output, shape index: {}]  }
   0x1   :  { %5722 = sst [smem:[#allocation33_spill]] %s5694_s0 }
   0x2   :  { %5723 = sst [smem:[#allocation34_spill]] %s5695_s1 }
   0x3   :  { %5724 = sst [smem:[#allocation35_spill]] %s5696_s2 }
   0x4   :  { %5725 = sst [smem:[#allocation36_spill]] %s5697_s3 }
   0x5   :  { %5726 = sst [smem:[#allocation37_spill]] %s5698_s4 }
   0x6   :  { %5727 = sst [smem:[#allocation38_spill]] %s5699_s5 }
   0x7   :  { %5728 = sst [smem:[#allocation39_spill]] %s5700_s6 }
   0x8   :  { %5729 = sst [smem:[#allocation40_spill]] %s5701_s7 }
   0x9   :  { %5730 = sst [smem:[#allocation41_spill]] %s5702_s8 }
   0xa   :  { %5731 = sst [smem:[#allocation42_spill]] %s5717_s23 }
   0xb   :  { %5732 = sst [smem:[#allocation43_spill]] %s5718_s24 }
   0xc   :  { %29 = vsyncpa [#allocation3], 0 }
   0xd   :  { %30 = vsyncpa [#allocation5], 0 }
   0xe   :  { %31 = vsyncpa [#allocation8], 0 }
   0xf   :  { %32 = vsyncpa [#allocation11], 0 }
  0x10   :  { %33 = vsyncpa [#allocation14], 0 }
  0x11   :  { %34 = vsyncpa [#allocation17], 0 }
  0x12   :  { %35 = vsyncpa [#allocation20], 0 }
  0x13   :  { %36 = vsyncpa [#allocation23], 0  ;;  %s4940_s5 = smov [#allocation4]   ;;  %s4941_s27 = smov [#allocation7]  }
  0x14   :  { %s54_s26 = sshll.u32 %s4940_s5, 4  ;;  %s76_s28 = sshll.u32 %s4941_s27, 4  ;;  %s55_s26 = int_to_ptr.vmem [resolvable:$true] %s54_s26  ;;  %s77_s28 = int_to_ptr.vmem [resolvable:$true] %s76_s28 }
  0x15   :  { %s4632_s6 = scalar_lea.vmem %s55_s26, 128  ;;  %p4637_p1 = scmp.lt.s32.totalorder %s55_s26, %s55_s26 }
  0x16   :  { %p4633_p0 = scmp.ne.s32.totalorder %s55_s26, %s4632_s6  ;;  %p4638_p2 = scmp.lt.s32.totalorder %s4632_s6, %s4632_s6 }
  0x18   :  { %p4639_p3 = por %p4638_p2, %p4637_p1 }
  0x1a   :  { %p4640_p4 = pnand %p4639_p3, %p4633_p0 }
  0x1c   :  { %4643 = shalt.err (!%p4640_p4)
}
  0x1d   :  { %s5720_s2 = smov 64   ;;  %s5721_s29 = smov 4  }
  0x1e   :  { %s5733_s30 = sld [smem:[#allocation34_spill]]  ;;  %s4652_s3 = scalar_lea.vmem %s77_s28, 1024 }
  0x1f   :  { %p4653_p5 = scmp.ne.s32.totalorder %s77_s28, %s4652_s3  ;;  %p4657_p6 = scmp.lt.s32.totalorder %s77_s28, %s77_s28 }
  0x20   :  { %p4658_p7 = scmp.lt.s32.totalorder %s4652_s3, %s4652_s3 }
  0x22   :  { %p4659_p8 = por %p4658_p7, %p4657_p6 }
  0x24   :  { %60 = dma.hbm_to_vmem [thread:$0]  %s5733_s30, 128, %s55_s26, [#allocation5], %s5720_s2, %s5720_s2, %s5721_s29  }
  0x25   :  { %p4660_p9 = pnand %p4659_p8, %p4653_p5 }
  0x27   :  { %4663 = shalt.err (!%p4660_p9)
}
  0x28   :  { %s4944_s25 = smov 256   ;;  %s4945_s8 = smov 16  }
  0x29   :  { %s5734_s5 = sld [smem:[#allocation36_spill]]  ;;  %s4946_s27 = smov [#allocation10]  }
  0x2a   :  { %s98_s6 = sshll.u32 %s4946_s27, 4  ;;  %s4947_s24 = smov [#allocation13]   ;;  %s99_s6 = int_to_ptr.vmem [resolvable:$true] %s98_s6 }
  0x2b   :  { %s120_s23 = sshll.u32 %s4947_s24, 4  ;;  %s4672_s26 = scalar_lea.vmem %s99_s6, 8192  ;;  %s121_s23 = int_to_ptr.vmem [resolvable:$true] %s120_s23 }
  0x2c   :  { %p4673_p10 = scmp.ne.s32.totalorder %s99_s6, %s4672_s26  ;;  %p4677_p11 = scmp.lt.s32.totalorder %s99_s6, %s99_s6 }
  0x2d   :  { %p4678_p12 = scmp.lt.s32.totalorder %s4672_s26, %s4672_s26 }
  0x2f   :  { %82 = dma.hbm_to_vmem [thread:$0]  %s5734_s5, 1024, %s77_s28, [#allocation8], %s4944_s25, %s4944_s25, %s4945_s8  }
  0x30   :  { %p4679_p13 = por %p4678_p12, %p4677_p11 }
  0x32   :  { %p4680_p0 = pnand %p4679_p13, %p4673_p10 }
  0x34   :  { %4683 = shalt.err (!%p4680_p0)
}
  0x35   :  { %s5735_s30 = sld [smem:[#allocation38_spill]]  ;;  %s4692_s3 = scalar_lea.vmem %s121_s23, 8192 }
  0x36   :  { %p4693_p1 = scmp.ne.s32.totalorder %s121_s23, %s4692_s3  ;;  %p4697_p2 = scmp.lt.s32.totalorder %s121_s23, %s121_s23 }
  0x37   :  { %p4698_p3 = scmp.lt.s32.totalorder %s4692_s3, %s4692_s3 }
  0x39   :  { %p4699_p4 = por %p4698_p3, %p4697_p2 }
  0x3b   :  { %104 = dma.hbm_to_vmem [thread:$0]  %s5735_s30, 8192, %s99_s6, [#allocation11], %s4944_s25, %s4944_s25, %s4945_s8  }
  0x3c   :  { %p4700_p5 = pnand %p4699_p4, %p4693_p1 }
  0x3e   :  { %4703 = shalt.err (!%p4700_p5)
}
  0x3f   :  { %s4948_s24 = smov 128   ;;  %s4949_s28 = smov 8  }
  0x40   :  { %s5736_s5 = sld [smem:[#allocation40_spill]]  ;;  %s4950_s27 = smov [#allocation16]  }
  0x41   :  { %s145_s26 = sshll.u32 %s4950_s27, 4  ;;  %s4951_s2 = smov [#allocation19]   ;;  %s146_s26 = int_to_ptr.vmem [resolvable:$true] %s145_s26 }
  0x42   :  { %s166_s29 = sshll.u32 %s4951_s2, 4  ;;  %s4712_s25 = scalar_lea.vmem %s146_s26, 16  ;;  %s167_s29 = int_to_ptr.vmem [resolvable:$true] %s166_s29 }
  0x43   :  { %p4713_p6 = scmp.ne.s32.totalorder %s146_s26, %s4712_s25  ;;  %s4716_s8 = scalar_lea.vmem %s146_s26, 32 }
  0x44   :  { %p4717_p7 = scmp.lt.s32.totalorder %s146_s26, %s146_s26  ;;  %p4718_p8 = scmp.lt.s32.totalorder %s4716_s8, %s4712_s25 }
  0x46   :  { %126 = dma.hbm_to_vmem [thread:$0]  %s5736_s5, 8192, %s121_s23, [#allocation14], %s4948_s24, %s4948_s24, %s4949_s28  }
  0x47   :  { %p4719_p9 = por %p4718_p8, %p4717_p7 }
  0x49   :  { %p4720_p10 = pnand %p4719_p9, %p4713_p6 }
  0x4b   :  { %4723 = shalt.err (!%p4720_p10)
}
  0x4c   :  { %148 = dma.hbm_to_vmem [thread:$0]  %s5704_s10, 16, %s146_s26, [#allocation17]  }
  0x4d   :  { %s4732_s7 = scalar_lea.vmem %s167_s29, 10240  ;;  %p4737_p12 = scmp.lt.s32.totalorder %s167_s29, %s167_s29 }
  0x4e   :  { %p4733_p11 = scmp.ne.s32.totalorder %s167_s29, %s4732_s7  ;;  %p4738_p13 = scmp.lt.s32.totalorder %s4732_s7, %s4732_s7 }
  0x50   :  { %p4739_p0 = por %p4738_p13, %p4737_p12 }
  0x52   :  { %p4740_p1 = pnand %p4739_p0, %p4733_p11 }
  0x54   :  { %4743 = shalt.err (!%p4740_p1)
}
  0x55   :  { %172 = dma.hbm_to_vmem [thread:$0]  %s5707_s13, 10240, %s167_s29, [#allocation20], %s4948_s24, %s4948_s24, %s4949_s28  }
  0x56   :  { %s4952_s30 = smov [#allocation22]   ;;  %s4953_s4 = smov [#allocation2]  }
  0x57   :  { %s191_s3 = sshll.u32 %s4952_s30, 4  ;;  %s42_s1 = sshll.u32 %s4953_s4, 4  ;;  %s192_s3 = int_to_ptr.vmem [resolvable:$true] %s191_s3  ;;  %s43_s1 = int_to_ptr.vmem [resolvable:$true] %s42_s1 }
  0x58   :  { %s4752_s5 = scalar_lea.vmem %s192_s3, 32  ;;  %p4757_p3 = scmp.lt.s32.totalorder %s192_s3, %s192_s3 }
  0x59   :  { %p4753_p2 = scmp.ne.s32.totalorder %s192_s3, %s4752_s5  ;;  %p4758_p4 = scmp.lt.s32.totalorder %s4752_s5, %s4752_s5 }
  0x5b   :  { %p4759_p5 = por %p4758_p4, %p4757_p3 }
  0x5d   :  { %p4760_p6 = pnand %p4759_p5, %p4753_p2 }
  0x5f   :  { %4763 = shalt.err (!%p4760_p6)
}
  0x60   :  { %194 = dma.hbm_to_vmem [thread:$0]  %s5710_s16, 32, %s192_s3, [#allocation23]  }
  0x61   :  { %s4772_s26 = scalar_lea.vmem %s43_s1, 128  ;;  %p4777_p8 = scmp.lt.s32.totalorder %s43_s1, %s43_s1 }
  0x62   :  { %p4773_p7 = scmp.ne.s32.totalorder %s43_s1, %s4772_s26  ;;  %p4778_p9 = scmp.lt.s32.totalorder %s4772_s26, %s4772_s26 }
  0x64   :  { %p4779_p10 = por %p4778_p9, %p4777_p8 }
  0x66   :  { %p4780_p11 = pnand %p4779_p10, %p4773_p7 }
  0x68   :  { %4783 = shalt.err (!%p4780_p11)
}
  0x69   :  { %s5737_s13 = smov 4   ;;  %s5738_s29 = smov 64  }
  0x6a   :  { %s5739_s25 = sld [smem:[#allocation33_spill]]  ;;  %s4954_s8 = smov [#allocation6]  }
  0x6b   :  { %s67_s6 = sshll.u32 %s4954_s8, 4  ;;  %s4955_s0 = smov [#allocation9]   ;;  %s68_s6 = int_to_ptr.vmem [resolvable:$true] %s67_s6 }
  0x6c   :  { %s89_s7 = sshll.u32 %s4955_s0, 4  ;;  %s4792_s16 = scalar_lea.vmem %s68_s6, 16  ;;  %s90_s7 = int_to_ptr.vmem [resolvable:$true] %s89_s7 }
  0x6d   :  { %p4793_p12 = scmp.ne.s32.totalorder %s68_s6, %s4792_s16  ;;  %s4796_s23 = scalar_lea.vmem %s68_s6, 32 }
  0x6e   :  { %p4797_p13 = scmp.lt.s32.totalorder %s68_s6, %s68_s6  ;;  %p4798_p0 = scmp.lt.s32.totalorder %s4796_s23, %s4792_s16 }
  0x70   :  { %48 = dma.hbm_to_vmem [thread:$0]  %s5739_s25, 128, %s43_s1, [#allocation3], %s5738_s29, %s5738_s29, %s5737_s13  }
  0x71   :  { %p4799_p1 = por %p4798_p0, %p4797_p13 }
  0x73   :  { %p4800_p2 = pnand %p4799_p1, %p4793_p12 }
  0x75   :  { %4803 = shalt.err (!%p4800_p2)
}
  0x76   :  { %s5740_s3 = sld [smem:[#allocation35_spill]]  ;;  %s4812_s4 = scalar_lea.vmem %s90_s7, 64 }
  0x77   :  { %p4813_p3 = scmp.ne.s32.totalorder %s90_s7, %s4812_s4  ;;  %p4817_p4 = scmp.lt.s32.totalorder %s90_s7, %s90_s7 }
  0x78   :  { %p4818_p5 = scmp.lt.s32.totalorder %s4812_s4, %s4812_s4 }
  0x7a   :  { %p4819_p6 = por %p4818_p5, %p4817_p4 }
  0x7c   :  { %70 = dma.hbm_to_vmem [thread:$0]  %s5740_s3, 16, %s68_s6, [#allocation5]  }
  0x7d   :  { %p4820_p7 = pnand %p4819_p6, %p4813_p3 }
  0x7f   :  { %4823 = shalt.err (!%p4820_p7)
}
  0x80   :  { %s5741_s10 = sld [smem:[#allocation37_spill]]  ;;  %s4956_s27 = smov [#allocation12]  }
  0x81   :  { %s111_s26 = sshll.u32 %s4956_s27, 4  ;;  %s4957_s13 = smov [#allocation15]   ;;  %s112_s26 = int_to_ptr.vmem [resolvable:$true] %s111_s26 }
  0x82   :  { %s133_s29 = sshll.u32 %s4957_s13, 4  ;;  %s4832_s24 = scalar_lea.vmem %s112_s26, 64  ;;  %s134_s29 = int_to_ptr.vmem [resolvable:$true] %s133_s29 }
  0x83   :  { %p4833_p8 = scmp.ne.s32.totalorder %s112_s26, %s4832_s24  ;;  %p4837_p9 = scmp.lt.s32.totalorder %s112_s26, %s112_s26 }
  0x84   :  { %p4838_p10 = scmp.lt.s32.totalorder %s4832_s24, %s4832_s24 }
  0x86   :  { %92 = dma.hbm_to_vmem [thread:$0]  %s5741_s10, 64, %s90_s7, [#allocation8]  }
  0x87   :  { %p4839_p11 = por %p4838_p10, %p4837_p9 }
  0x89   :  { %p4840_p12 = pnand %p4839_p11, %p4833_p8 }
  0x8b   :  { %4843 = shalt.err (!%p4840_p12)
}
  0x8c   :  { %s5742_s8 = sld [smem:[#allocation39_spill]]  ;;  %s4852_s6 = scalar_lea.vmem %s134_s29, 32 }
  0x8d   :  { %p4853_p13 = scmp.ne.s32.totalorder %s134_s29, %s4852_s6  ;;  %p4857_p0 = scmp.lt.s32.totalorder %s134_s29, %s134_s29 }
  0x8e   :  { %p4858_p1 = scmp.lt.s32.totalorder %s4852_s6, %s4852_s6 }
  0x90   :  { %p4859_p2 = por %p4858_p1, %p4857_p0 }
  0x92   :  { %114 = dma.hbm_to_vmem [thread:$0]  %s5742_s8, 64, %s112_s26, [#allocation11]  }
  0x93   :  { %p4860_p3 = pnand %p4859_p2, %p4853_p13 }
  0x95   :  { %4863 = shalt.err (!%p4860_p3)
}
  0x96   :  { %s5743_s16 = sld [smem:[#allocation41_spill]]  ;;  %s4958_s23 = smov [#allocation18]  }
  0x97   :  { %s157_s2 = sshll.u32 %s4958_s23, 4  ;;  %s4959_s30 = smov [#allocation21]   ;;  %s158_s2 = int_to_ptr.vmem [resolvable:$true] %s157_s2 }
  0x98   :  { %s179_s3 = sshll.u32 %s4959_s30, 4  ;;  %s4872_s4 = scalar_lea.vmem %s158_s2, 80  ;;  %s180_s3 = int_to_ptr.vmem [resolvable:$true] %s179_s3 }
  0x99   :  { %p4873_p4 = scmp.ne.s32.totalorder %s158_s2, %s4872_s4  ;;  %s4876_s1 = scalar_lea.vmem %s158_s2, 96 }
  0x9a   :  { %p4877_p5 = scmp.lt.s32.totalorder %s158_s2, %s158_s2  ;;  %p4878_p6 = scmp.lt.s32.totalorder %s4876_s1, %s4872_s4 }
  0x9c   :  { %136 = dma.hbm_to_vmem [thread:$0]  %s5743_s16, 32, %s134_s29, [#allocation14]  }
  0x9d   :  { %p4879_p7 = por %p4878_p6, %p4877_p5 }
  0x9f   :  { %p4880_p8 = pnand %p4879_p7, %p4873_p4 }
  0xa1   :  { %4883 = shalt.err (!%p4880_p8)
}
  0xa2   :  { %160 = dma.hbm_to_vmem [thread:$0]  %s5706_s12, 80, %s158_s2, [#allocation17]  }
  0xa3   :  { %s4892_s27 = scalar_lea.vmem %s180_s3, 32  ;;  %p4897_p10 = scmp.lt.s32.totalorder %s180_s3, %s180_s3 }
  0xa4   :  { %p4893_p9 = scmp.ne.s32.totalorder %s180_s3, %s4892_s27  ;;  %p4898_p11 = scmp.lt.s32.totalorder %s4892_s27, %s4892_s27 }
  0xa6   :  { %p4899_p12 = por %p4898_p11, %p4897_p10 }
  0xa8   :  { %p4900_p13 = pnand %p4899_p12, %p4893_p9 }
  0xaa   :  { %4903 = shalt.err (!%p4900_p13)
}
  0xab   :  { %182 = dma.hbm_to_vmem [thread:$0]  %s5708_s14, 32, %s180_s3, [#allocation20]  }
  0xac   :  { %s4960_s29 = smov [#allocation24]  }
  0xad   :  { %s205_s24 = sshll.u32 %s4960_s29, 4  ;;  %s206_s24 = int_to_ptr.vmem [resolvable:$true] %s205_s24 }
  0xae   :  { %s4912_s28 = scalar_lea.vmem %s206_s24, 16  ;;  %s4916_s25 = scalar_lea.vmem %s206_s24, 32 }
  0xaf   :  { %p4913_p0 = scmp.ne.s32.totalorder %s206_s24, %s4912_s28  ;;  %p4917_p1 = scmp.lt.s32.totalorder %s206_s24, %s206_s24 }
  0xb0   :  { %p4918_p2 = scmp.lt.s32.totalorder %s4916_s25, %s4912_s28 }
  0xb2   :  { %p4919_p3 = por %p4918_p2, %p4917_p1 }
  0xb4   :  { %p4920_p4 = pnand %p4919_p3, %p4913_p0 }
  0xb6   :  { %4923 = shalt.err (!%p4920_p4)
}
  0xb7   :  { %208 = dma.hbm_to_vmem [thread:$0]  %s5713_s19, 16, %s206_s24, [#allocation23]  }
  0xb8   :  { %4924 = dma.done.wait [#allocation3], 128  }
  0xb9   :  { %4925 = vsyncadd [#allocation3], 4294967168 }
  0xba   :  { %4926 = dma.done.wait [#allocation5], 144  }
  0xbb   :  { %4927 = vsyncadd [#allocation5], 4294967152 }
  0xbc   :  { %4928 = dma.done.wait [#allocation8], 1088  }
  0xbd   :  { %4929 = vsyncadd [#allocation8], 4294966208 }
  0xbe   :  { %4930 = dma.done.wait [#allocation11], 8256  }
  0xbf   :  { %4931 = vsyncadd [#allocation11], 4294959040 }
  0xc0   :  { %4932 = dma.done.wait [#allocation14], 8224  }
  0xc1   :  { %4933 = vsyncadd [#allocation14], 4294959072 }
  0xc2   :  { %4934 = dma.done.wait [#allocation17], 96  }
  0xc3   :  { %4935 = vsyncadd [#allocation17], 4294967200 }
  0xc4   :  { %4936 = dma.done.wait [#allocation20], 10272  }
  0xc5   :  { %4937 = vsyncadd [#allocation20], 4294957024 }
  0xc6   :  { %4938 = dma.done.wait [#allocation23], 48  }
  0xc7   :  { %4939 = vsyncadd [#allocation23], 4294967248  ;;  %v4961_v0 = vmov 0.0   ;;  %vm4962_vm0 = vmmov 0   ;;  %vm288_vm1 = vcmask 1045504   ;;  %v4104_v3 = vld [vmem:[#allocation2] sm:$0xff]  }
  0xc8   :  { %4047 = vmatprep.subr.bf16.mxu0 %v4961_v0  ;;  %4049 = vmatprep.mubr.msk.bf16.mxu0 %vm4962_vm0, %v4961_v0  ;;  %v4103_v1 = vld [vmem:[#allocation4] sm:$0x3f]   ;;  %vm284_vm2 = vcmask 97280   ;;  %v4109_v5 = vld [vmem:[#allocation7 + $0x2c] ss:$16 sps:$4 sm:$0xff]   ;;  %v4963_v12 = vmov 0  }
  0xc9   :  { %v290_v2 = vsel %vm288_vm1, %v4103_v1, 0  ;;  %v4105_v4 = vld [vmem:[#allocation7 + $0x24] ss:$16 sps:$4 sm:$0xff]   ;;  %v4107_v6 = vld [vmem:[#allocation7 + $0x28] ss:$16 sps:$4 sm:$0xff]   ;;  %442 = vmatprep.mubr.bf16.mxu1 %v4963_v12  ;;  %vm406_vm3 = vcmask 261120  }
  0xca   :  { %4048 = vmatpush3.bf16.msra.mxu0 %v290_v2  ;;  %v4110_v7 = vld [vmem:[#allocation7 + $0x20] ss:$16 sps:$4 sm:$0xff]   ;;  %422 = vmatprep.subr.bf16.mxu1 %v4105_v4  ;;  %v4111_v8 = vld [vmem:[#allocation7 + $0x4] ss:$16 sps:$4 sm:$0xff]   ;;  %v4115_v9 = vld [vmem:[#allocation7 + $0xc] ss:$16 sps:$4 sm:$0xff]  }
  0xcb   :  { %465 = vmatprep.subr.bf16.mxu0 %v4109_v5  ;;  %423 = vmatpush1.bf16.msra.mxu1 %v4110_v7  ;;  %v4113_v10 = vld [vmem:[#allocation7 + $0x8] ss:$16 sps:$4 sm:$0xff]   ;;  %v4116_v11 = vld [vmem:[#allocation7] ss:$16 sps:$4 sm:$0xff]   ;;  %v3614_v15 = vld [vmem:[#allocation6] ss:$0 sm:$0xff] }
  0xcc   :  { %424 = vmatprep.subr.bf16.mxu1 %v4111_v8  ;;  %v4119_v13 = vld [vmem:[#allocation10 + $0xe4] ss:$16 sps:$4 sm:$0xff]   ;;  %v4122_v14 = vld [vmem:[#allocation10 + $0xec] ss:$16 sps:$4 sm:$0xff]   ;;  %v4117_v24 = vld [vmem:[#allocation10 + $0xe0] ss:$16 sps:$4 sm:$0xff]  }
  0xcd   :  { %4050 = vmatmul.mubr.msk.bf16.vlgmr.msra.gmra.mxu0 %vm284_vm2, %v4104_v3  ;;  %v4120_v25 = vld [vmem:[#allocation10 + $0xe8] ss:$16 sps:$4 sm:$0xff]   ;;  %v4125_v27 = vld [vmem:[#allocation10 + $0xc4] ss:$16 sps:$4 sm:$0xff]   ;;  %v4128_v28 = vld [vmem:[#allocation10 + $0xcc] ss:$16 sps:$4 sm:$0xff]  }
  0xce   :  { %466 = vmatpush1.bf16.msra.mxu0 %v4107_v6  ;;  %485 = vmatprep.mubr.bf16.mxu0 %v4963_v12  ;;  %v4123_v29 = vld [vmem:[#allocation10 + $0xc0] ss:$16 sps:$4 sm:$0xff]   ;;  %v4126_v30 = vld [vmem:[#allocation10 + $0xc8] ss:$16 sps:$4 sm:$0xff]   ;;  %v4131_v31 = vld [vmem:[#allocation10 + $0xa4] ss:$16 sps:$4 sm:$0xff]  }
  0xcf   :  { %467 = vmatprep.subr.bf16.mxu0 %v4115_v9  ;;  %425 = vmatpush1.bf16.msra.mxu1 %v4116_v11  ;;  %v4134_v32 = vld [vmem:[#allocation10 + $0xac] ss:$16 sps:$4 sm:$0xff]   ;;  %v4129_v33 = vld [vmem:[#allocation10 + $0xa0] ss:$16 sps:$4 sm:$0xff]   ;;  %v4132_v34 = vld [vmem:[#allocation10 + $0xa8] ss:$16 sps:$4 sm:$0xff]  }
  0xd0   :  { %914 = vmatprep.subr.bf16.mxu1 %v4119_v13  ;;  %v4137_v35 = vld [vmem:[#allocation10 + $0x84] ss:$16 sps:$4 sm:$0xff]   ;;  %v4140_v36 = vld [vmem:[#allocation10 + $0x8c] ss:$16 sps:$4 sm:$0xff]   ;;  %v4135_v37 = vld [vmem:[#allocation10 + $0x80] ss:$16 sps:$4 sm:$0xff]  }
  0xd1   :  { %v4138_v38 = vld [vmem:[#allocation10 + $0x88] ss:$16 sps:$4 sm:$0xff]   ;;  %v4143_v39 = vld [vmem:[#allocation10 + $0x64] ss:$16 sps:$4 sm:$0xff]   ;;  %v4146_v40 = vld [vmem:[#allocation10 + $0x6c] ss:$16 sps:$4 sm:$0xff]  }
  0xd2   :  { %468 = vmatpush1.bf16.msra.mxu0 %v4113_v10  ;;  %v4141_v41 = vld [vmem:[#allocation10 + $0x60] ss:$16 sps:$4 sm:$0xff]   ;;  %v4144_v42 = vld [vmem:[#allocation10 + $0x68] ss:$16 sps:$4 sm:$0xff]   ;;  %v4149_v43 = vld [vmem:[#allocation10 + $0x44] ss:$16 sps:$4 sm:$0xff]  }
  0xd3   :  { %957 = vmatprep.subr.bf16.mxu0 %v4122_v14  ;;  %v4152_v44 = vld [vmem:[#allocation10 + $0x4c] ss:$16 sps:$4 sm:$0xff]   ;;  %v4147_v45 = vld [vmem:[#allocation10 + $0x40] ss:$16 sps:$4 sm:$0xff]   ;;  %v4150_v46 = vld [vmem:[#allocation10 + $0x48] ss:$16 sps:$4 sm:$0xff]  }
  0xd4   :  { %v4155_v47 = vld [vmem:[#allocation10 + $0x24] ss:$16 sps:$4 sm:$0xff]   ;;  %v4158_v48 = vld [vmem:[#allocation10 + $0x2c] ss:$16 sps:$4 sm:$0xff]   ;;  %v4153_v49 = vld [vmem:[#allocation10 + $0x20] ss:$16 sps:$4 sm:$0xff]  }
  0xd5   :  { %v4156_v50 = vld [vmem:[#allocation10 + $0x28] ss:$16 sps:$4 sm:$0xff]   ;;  %v4161_v51 = vld [vmem:[#allocation10 + $0x4] ss:$16 sps:$4 sm:$0xff]   ;;  %v4164_v52 = vld [vmem:[#allocation10 + $0xc] ss:$16 sps:$4 sm:$0xff]  }
  0xd6   :  { %v4159_v53 = vld [vmem:[#allocation10] ss:$16 sps:$4 sm:$0xff]   ;;  %v4162_v54 = vld [vmem:[#allocation10 + $0x8] ss:$16 sps:$4 sm:$0xff]   ;;  %v4167_v55 = vld [vmem:[#allocation10 + $0x1e4] ss:$16 sps:$4 sm:$0xff]  }
  0xd7   :  { %v4170_v56 = vld [vmem:[#allocation10 + $0x1ec] ss:$16 sps:$4 sm:$0xff]   ;;  %v4165_v57 = vld [vmem:[#allocation10 + $0x1e0] ss:$16 sps:$4 sm:$0xff]   ;;  %v4168_v58 = vld [vmem:[#allocation10 + $0x1e8] ss:$16 sps:$4 sm:$0xff]  }
  0xd8   :  { %v4173_v59 = vld [vmem:[#allocation10 + $0x1c4] ss:$16 sps:$4 sm:$0xff]   ;;  %v4176_v60 = vld [vmem:[#allocation10 + $0x1cc] ss:$16 sps:$4 sm:$0xff]   ;;  %v4171_v61 = vld [vmem:[#allocation10 + $0x1c0] ss:$16 sps:$4 sm:$0xff]  }
  0xd9   :  { %v4174_v62 = vld [vmem:[#allocation10 + $0x1c8] ss:$16 sps:$4 sm:$0xff]   ;;  %v4179_v63 = vld [vmem:[#allocation10 + $0x1a4] ss:$16 sps:$4 sm:$0xff]   ;;  %v4182_v1 = vld [vmem:[#allocation10 + $0x1ac] ss:$16 sps:$4 sm:$0xff]  }
  0xda   :  { %v4177_v2 = vld [vmem:[#allocation10 + $0x1a0] ss:$16 sps:$4 sm:$0xff]   ;;  %v4180_v3 = vld [vmem:[#allocation10 + $0x1a8] ss:$16 sps:$4 sm:$0xff]   ;;  %v4185_v4 = vld [vmem:[#allocation10 + $0x184] ss:$16 sps:$4 sm:$0xff]  }
  0xdb   :  { %v4188_v5 = vld [vmem:[#allocation10 + $0x18c] ss:$16 sps:$4 sm:$0xff]   ;;  %v4183_v6 = vld [vmem:[#allocation10 + $0x180] ss:$16 sps:$4 sm:$0xff]   ;;  %v4186_v7 = vld [vmem:[#allocation10 + $0x188] ss:$16 sps:$4 sm:$0xff]  }
  0xdc   :  { %v4191_v8 = vld [vmem:[#allocation10 + $0x164] ss:$16 sps:$4 sm:$0xff]   ;;  %v4194_v9 = vld [vmem:[#allocation10 + $0x16c] ss:$16 sps:$4 sm:$0xff]   ;;  %v4189_v10 = vld [vmem:[#allocation10 + $0x160] ss:$16 sps:$4 sm:$0xff]  }
  0xdd   :  { %v4192_v11 = vld [vmem:[#allocation10 + $0x168] ss:$16 sps:$4 sm:$0xff]   ;;  %v4197_v13 = vld [vmem:[#allocation10 + $0x144] ss:$16 sps:$4 sm:$0xff]   ;;  %v4200_v14 = vld [vmem:[#allocation10 + $0x14c] ss:$16 sps:$4 sm:$0xff]  }
  0xde   :  { %vm3344_vm4 = vcmask 523264   ;;  %vm3554_vm5 = vcmask 130048   ;;  %s5744_s16 = sld [smem:[#allocation42_spill]]  ;;  %vm3599_vm6 = vcmask 15360  }
 0x18d   :  { %v326_v16 = vpop.f32.mrf.mxu0 }
 0x18e   :  { %v327_v18 = vadd.f32 %v3614_v15, %v326_v16  ;;  %v4198_v16 = vld [vmem:[#allocation10 + $0x148] ss:$16 sps:$4 sm:$0xff]  }
 0x18f   :  { %v4051_v17 = vpop.f32.mrf.mxu0 }
 0x190   :  { %v333_v22 = vmax.f32 %v327_v18, 0.0  ;;  %v4203_v17 = vld [vmem:[#allocation10 + $0x124] ss:$16 sps:$4 sm:$0xff]   ;;  %v4206_v18 = vld [vmem:[#allocation10 + $0x12c] ss:$16 sps:$4 sm:$0xff]  }
 0x191   :  { %v329_v19 = vpop.f32.mrf.mxu0 }
 0x192   :  { %v330_v20 = vadd.f32 %v3614_v15, %v329_v19  ;;  %v4195_v15 = vld [vmem:[#allocation10 + $0x140] ss:$16 sps:$4 sm:$0xff]  }
 0x193   :  { %v4052_v21 = vpop.f32.mrf.mxu0  ;;  %v4201_v19 = vld [vmem:[#allocation10 + $0x120] ss:$16 sps:$4 sm:$0xff]  }
 0x194   :  { %v334_v23 = vmax.f32 %v330_v20, 0.0  ;;  %v4204_v20 = vld [vmem:[#allocation10 + $0x128] ss:$16 sps:$4 sm:$0xff]   ;;  %v4209_v21 = vld [vmem:[#allocation10 + $0x104] ss:$16 sps:$4 sm:$0xff]  }
 0x196   :  { %v335_v26 = vpack.c.bf16 %v334_v23, %v333_v22  ;;  %v4212_v22 = vld [vmem:[#allocation10 + $0x10c] ss:$16 sps:$4 sm:$0xff]   ;;  %v4207_v23 = vld [vmem:[#allocation10 + $0x100] ss:$16 sps:$4 sm:$0xff]  }
 0x198   :  { %3626 = vmatmul.mubr.msk.bf16.vlgmr.msra.gmra.mxu1 %vm406_vm3, %v335_v26  ;;  %3627 = vmatmul.mubr.msk.bf16.vlgmr.msra.gmra.mxu0 %vm406_vm3, %v335_v26  ;;  %v4218_v26 = vld [vmem:[#allocation13 + $0x74] ss:$8 sps:$4 sm:$0xff]  }
 0x199   :  { %915 = vmatpush1.bf16.msra.mxu1 %v4117_v24  ;;  %958 = vmatpush1.bf16.msra.mxu0 %v4120_v25  ;;  %v4210_v24 = vld [vmem:[#allocation10 + $0x108] ss:$16 sps:$4 sm:$0xff]  }
 0x19a   :  { %916 = vmatprep.subr.bf16.mxu1 %v4125_v27  ;;  %959 = vmatprep.subr.bf16.mxu0 %v4128_v28  ;;  %v4215_v25 = vld [vmem:[#allocation13 + $0x174] ss:$8 sps:$4 sm:$0xff]   ;;  %v346_v27 = vlaneseq }
 0x19c   :  { %v5147_v28 = vshrl.u32 %v346_v27, 7  ;;  %v4266_v27 = vld [vmem:[#allocation13 + $0xf4] ss:$8 sps:$4 sm:$0xff]  }
 0x19d   :  { %917 = vmatpush1.bf16.msra.mxu1 %v4123_v29  ;;  %960 = vmatpush1.bf16.msra.mxu0 %v4126_v30  ;;  %v5152_v30 = vld [vmem:[#allocation9] sm:$0xf] }
 0x19e   :  { %918 = vmatprep.subr.bf16.mxu1 %v4131_v31  ;;  %961 = vmatprep.subr.bf16.mxu0 %v4134_v32  ;;  %v5150_v29 = vsub.s32 2, %v5147_v28  ;;  %v5155_v31 = vsub.s32 1, %v5147_v28  ;;  %v5158_v32 = vsub.s32 0, %v5147_v28 }
 0x1a1   :  { %919 = vmatpush1.bf16.msra.mxu1 %v4129_v33  ;;  %962 = vmatpush1.bf16.msra.mxu0 %v4132_v34  ;;  %v357_v33 = vrot.slane %v5152_v30, %v5150_v29 }
 0x1a2   :  { %920 = vmatprep.subr.bf16.mxu1 %v4137_v35  ;;  %963 = vmatprep.subr.bf16.mxu0 %v4140_v36  ;;  %v353_v36 = vrot.slane %v5152_v30, %v5155_v31 }
 0x1a5   :  { %921 = vmatpush1.bf16.msra.mxu1 %v4135_v37  ;;  %964 = vmatpush1.bf16.msra.mxu0 %v4138_v38  ;;  %v349_v37 = vrot.slane %v5152_v30, %v5158_v32 }
 0x1a6   :  { %922 = vmatprep.subr.bf16.mxu1 %v4143_v39  ;;  %965 = vmatprep.subr.bf16.mxu0 %v4146_v40 }
 0x1a9   :  { %923 = vmatpush1.bf16.msra.mxu1 %v4141_v41  ;;  %966 = vmatpush1.bf16.msra.mxu0 %v4144_v42 }
 0x1aa   :  { %924 = vmatprep.subr.bf16.mxu1 %v4149_v43  ;;  %967 = vmatprep.subr.bf16.mxu0 %v4152_v44 }
 0x1ad   :  { %925 = vmatpush1.bf16.msra.mxu1 %v4147_v45  ;;  %968 = vmatpush1.bf16.msra.mxu0 %v4150_v46 }
 0x1ae   :  { %926 = vmatprep.subr.bf16.mxu1 %v4155_v47  ;;  %969 = vmatprep.subr.bf16.mxu0 %v4158_v48 }
 0x1b1   :  { %927 = vmatpush1.bf16.msra.mxu1 %v4153_v49  ;;  %970 = vmatpush1.bf16.msra.mxu0 %v4156_v50 }
 0x1b2   :  { %928 = vmatprep.subr.bf16.mxu1 %v4161_v51  ;;  %971 = vmatprep.subr.bf16.mxu0 %v4164_v52 }
 0x1b5   :  { %929 = vmatpush1.bf16.msra.mxu1 %v4159_v53  ;;  %972 = vmatpush1.bf16.msra.mxu0 %v4162_v54 }
 0x1b6   :  { %930 = vmatprep.subr.bf16.mxu1 %v4167_v55  ;;  %973 = vmatprep.subr.bf16.mxu0 %v4170_v56 }
 0x1b9   :  { %931 = vmatpush2.bf16.msra.mxu1 %v4165_v57  ;;  %974 = vmatpush2.bf16.msra.mxu0 %v4168_v58  ;;  %v4213_v57 = vld [vmem:[#allocation13 + $0x170] ss:$8 sps:$4 sm:$0xff]  }
 0x1ba   :  { %932 = vmatprep.subr.bf16.mxu1 %v4173_v59  ;;  %975 = vmatprep.subr.bf16.mxu0 %v4176_v60  ;;  %v4216_v58 = vld [vmem:[#allocation13 + $0x70] ss:$8 sps:$4 sm:$0xff]   ;;  %v4221_v60 = vld [vmem:[#allocation13 + $0x164] ss:$8 sps:$4 sm:$0xff]  }
 0x1bd   :  { %933 = vmatpush2.bf16.msra.mxu1 %v4171_v61  ;;  %976 = vmatpush2.bf16.msra.mxu0 %v4174_v62  ;;  %v4224_v61 = vld [vmem:[#allocation13 + $0x64] ss:$8 sps:$4 sm:$0xff]   ;;  %v4219_v62 = vld [vmem:[#allocation13 + $0x160] ss:$8 sps:$4 sm:$0xff]  }
 0x1be   :  { %934 = vmatprep.subr.bf16.mxu1 %v4179_v63  ;;  %977 = vmatprep.subr.bf16.mxu0 %v4182_v1  ;;  %v4222_v63 = vld [vmem:[#allocation13 + $0x60] ss:$8 sps:$4 sm:$0xff]   ;;  %v4227_v1 = vld [vmem:[#allocation13 + $0x154] ss:$8 sps:$4 sm:$0xff]  }
 0x1c1   :  { %935 = vmatpush2.bf16.msra.mxu1 %v4177_v2  ;;  %978 = vmatpush2.bf16.msra.mxu0 %v4180_v3  ;;  %v4230_v2 = vld [vmem:[#allocation13 + $0x54] ss:$8 sps:$4 sm:$0xff]   ;;  %v4225_v3 = vld [vmem:[#allocation13 + $0x150] ss:$8 sps:$4 sm:$0xff]  }
 0x1c2   :  { %936 = vmatprep.subr.bf16.mxu1 %v4185_v4  ;;  %979 = vmatprep.subr.bf16.mxu0 %v4188_v5  ;;  %v4228_v4 = vld [vmem:[#allocation13 + $0x50] ss:$8 sps:$4 sm:$0xff]   ;;  %v4233_v5 = vld [vmem:[#allocation13 + $0x144] ss:$8 sps:$4 sm:$0xff]  }
 0x1c5   :  { %937 = vmatpush2.bf16.msra.mxu1 %v4183_v6  ;;  %980 = vmatpush2.bf16.msra.mxu0 %v4186_v7  ;;  %v4236_v6 = vld [vmem:[#allocation13 + $0x44] ss:$8 sps:$4 sm:$0xff]   ;;  %v4231_v7 = vld [vmem:[#allocation13 + $0x140] ss:$8 sps:$4 sm:$0xff]  }
 0x1c6   :  { %938 = vmatprep.subr.bf16.mxu1 %v4191_v8  ;;  %981 = vmatprep.subr.bf16.mxu0 %v4194_v9  ;;  %v4234_v8 = vld [vmem:[#allocation13 + $0x40] ss:$8 sps:$4 sm:$0xff]   ;;  %v4239_v9 = vld [vmem:[#allocation13 + $0x134] ss:$8 sps:$4 sm:$0xff]  }
 0x1c9   :  { %939 = vmatpush2.bf16.msra.mxu1 %v4189_v10  ;;  %982 = vmatpush2.bf16.msra.mxu0 %v4192_v11  ;;  %v4242_v10 = vld [vmem:[#allocation13 + $0x34] ss:$8 sps:$4 sm:$0xff]   ;;  %v4237_v11 = vld [vmem:[#allocation13 + $0x130] ss:$8 sps:$4 sm:$0xff]  }
 0x1ca   :  { %940 = vmatprep.subr.bf16.mxu1 %v4197_v13  ;;  %983 = vmatprep.subr.bf16.mxu0 %v4200_v14  ;;  %v4240_v13 = vld [vmem:[#allocation13 + $0x30] ss:$8 sps:$4 sm:$0xff]   ;;  %v4245_v14 = vld [vmem:[#allocation13 + $0x124] ss:$8 sps:$4 sm:$0xff]  }
 0x1cd   :  { %941 = vmatpush2.bf16.msra.mxu1 %v4195_v15  ;;  %984 = vmatpush2.bf16.msra.mxu0 %v4198_v16  ;;  %v4248_v15 = vld [vmem:[#allocation13 + $0x24] ss:$8 sps:$4 sm:$0xff]   ;;  %v4243_v16 = vld [vmem:[#allocation13 + $0x120] ss:$8 sps:$4 sm:$0xff]  }
 0x1ce   :  { %942 = vmatprep.subr.bf16.mxu1 %v4203_v17  ;;  %985 = vmatprep.subr.bf16.mxu0 %v4206_v18  ;;  %v4246_v17 = vld [vmem:[#allocation13 + $0x20] ss:$8 sps:$4 sm:$0xff]   ;;  %v4251_v18 = vld [vmem:[#allocation13 + $0x114] ss:$8 sps:$4 sm:$0xff]  }
 0x1d1   :  { %943 = vmatpush2.bf16.msra.mxu1 %v4201_v19  ;;  %986 = vmatpush2.bf16.msra.mxu0 %v4204_v20  ;;  %v4254_v19 = vld [vmem:[#allocation13 + $0x14] ss:$8 sps:$4 sm:$0xff]   ;;  %v4249_v20 = vld [vmem:[#allocation13 + $0x110] ss:$8 sps:$4 sm:$0xff]  }
 0x1d2   :  { %944 = vmatprep.subr.bf16.mxu1 %v4209_v21  ;;  %987 = vmatprep.subr.bf16.mxu0 %v4212_v22  ;;  %v4252_v21 = vld [vmem:[#allocation13 + $0x10] ss:$8 sps:$4 sm:$0xff]   ;;  %v4257_v22 = vld [vmem:[#allocation13 + $0x104] ss:$8 sps:$4 sm:$0xff]  }
 0x1d5   :  { %945 = vmatpush2.bf16.msra.mxu1 %v4207_v23  ;;  %988 = vmatpush2.bf16.msra.mxu0 %v4210_v24  ;;  %v4260_v23 = vld [vmem:[#allocation13 + $0x4] ss:$8 sps:$4 sm:$0xff]   ;;  %v4255_v24 = vld [vmem:[#allocation13 + $0x100] ss:$8 sps:$4 sm:$0xff]  }
 0x1d6   :  { %1451 = vmatprep.subr.bf16.mxu0 %v4215_v25  ;;  %1408 = vmatprep.subr.bf16.mxu1 %v4218_v26  ;;  %v4258_v25 = vld [vmem:[#allocation13] ss:$8 sps:$4 sm:$0xff]   ;;  %v4263_v26 = vld [vmem:[#allocation13 + $0x1f4] ss:$8 sps:$4 sm:$0xff]  }
 0x258   :  { %v444_v34 = vpop.f32.mrf.mxu1  ;;  %v487_v35 = vpop.f32.mrf.mxu0 }
 0x259   :  { %v488_v40 = vadd.f32 %v487_v35, %v357_v33  ;;  %v445_v46 = vadd.f32 %v444_v34, %v349_v37  ;;  %v4264_v34 = vld [vmem:[#allocation13 + $0xf0] ss:$8 sps:$4 sm:$0xff]   ;;  %v4269_v35 = vld [vmem:[#allocation13 + $0x1e4] ss:$8 sps:$4 sm:$0xff]  }
 0x25a   :  { %v446_v38 = vpop.f32.mrf.mxu1  ;;  %v5166_v39 = vpop.f32.mrf.mxu0 }
 0x25b   :  { %v447_v43 = vadd.f32 %v446_v38, %v353_v36  ;;  %v498_v48 = vmax.f32 %v488_v40, 0.0  ;;  %v496_v55 = vmax.f32 %v445_v46, 0.0  ;;  %v4270_v38 = vld [vmem:[#allocation13 + $0xe0] ss:$8 sps:$4 sm:$0xff]   ;;  %v4275_v40 = vld [vmem:[#allocation13 + $0x1d4] ss:$8 sps:$4 sm:$0xff]  }
 0x25c   :  { %v448_v41 = vpop.f32.mrf.mxu1  ;;  %v491_v42 = vpop.f32.mrf.mxu0  ;;  %v4279_v46 = vld [vmem:[#allocation13 + $0x1c0] ss:$8 sps:$4 sm:$0xff]  }
 0x25d   :  { %v449_v44 = vadd.f32 %v448_v41, %v349_v37  ;;  %v492_v45 = vadd.f32 %v491_v42, %v357_v33  ;;  %v497_v52 = vmax.f32 %v447_v43, 0.0  ;;  %v4261_v33 = vld [vmem:[#allocation13 + $0x1f0] ss:$8 sps:$4 sm:$0xff]   ;;  %v4267_v37 = vld [vmem:[#allocation13 + $0x1e0] ss:$8 sps:$4 sm:$0xff]  }
 0x25e   :  { %v450_v47 = vpop.f32.mrf.mxu1  ;;  %v4278_v41 = vld [vmem:[#allocation13 + $0xd4] ss:$8 sps:$4 sm:$0xff]   ;;  %v4273_v42 = vld [vmem:[#allocation13 + $0x1d0] ss:$8 sps:$4 sm:$0xff]  }
 0x25f   :  { %v502_v49 = vmax.f32 %v492_v45, 0.0  ;;  %v451_v50 = vadd.f32 %v450_v47, %v353_v36  ;;  %v500_v51 = vmax.f32 %v449_v44, 0.0  ;;  %v4272_v36 = vld [vmem:[#allocation13 + $0xe4] ss:$8 sps:$4 sm:$0xff]   ;;  %v4276_v43 = vld [vmem:[#allocation13 + $0xd0] ss:$8 sps:$4 sm:$0xff]  }
 0x260   :  { %v4281_v44 = vld [vmem:[#allocation13 + $0x1c4] ss:$8 sps:$4 sm:$0xff]   ;;  %v4282_v47 = vld [vmem:[#allocation13 + $0xc0] ss:$8 sps:$4 sm:$0xff]  }
 0x261   :  { %v5168_v53 = vpack.c.bf16 %v502_v49, %v498_v48  ;;  %v501_v54 = vmax.f32 %v451_v50, 0.0  ;;  %v504_v59 = vpack.c.bf16 %v500_v51, %v496_v55  ;;  %v4284_v45 = vld [vmem:[#allocation13 + $0xc4] ss:$8 sps:$4 sm:$0xff]   ;;  %v4287_v48 = vld [vmem:[#allocation13 + $0x1b4] ss:$8 sps:$4 sm:$0xff]  }
 0x262   :  { %v4290_v49 = vld [vmem:[#allocation13 + $0xb4] ss:$8 sps:$4 sm:$0xff]   ;;  %v4285_v50 = vld [vmem:[#allocation13 + $0x1b0] ss:$8 sps:$4 sm:$0xff]   ;;  %v4296_v55 = vld [vmem:[#allocation13 + $0xa4] ss:$8 sps:$4 sm:$0xff]  }
 0x263   :  { %v505_v56 = vpack.c.bf16 %v501_v54, %v497_v52  ;;  %v4288_v51 = vld [vmem:[#allocation13 + $0xb0] ss:$8 sps:$4 sm:$0xff]   ;;  %v4293_v52 = vld [vmem:[#allocation13 + $0x1a4] ss:$8 sps:$4 sm:$0xff]   ;;  %v4291_v54 = vld [vmem:[#allocation13 + $0x1a0] ss:$8 sps:$4 sm:$0xff]  }
 0x265   :  { %946 = vmatprep.mubr.bf16.mxu1 %v505_v56  ;;  %989 = vmatprep.mubr.bf16.mxu0 %v505_v56  ;;  %v4294_v56 = vld [vmem:[#allocation13 + $0xa0] ss:$8 sps:$4 sm:$0xff]  }
 0x266   :  { %947 = vmatmul.mubr.bf16.vlgmr.msra.gmra.mxu1 %v504_v59  ;;  %990 = vmatmul.mubr.bf16.vlgmr.msra.gmra.mxu0 %v504_v59  ;;  %v4302_v59 = vld [vmem:[#allocation13 + $0x94] ss:$8 sps:$4 sm:$0xff]  }
 0x267   :  { %1452 = vmatpush1.bf16.msra.mxu0 %v4213_v57  ;;  %1409 = vmatpush1.bf16.msra.mxu1 %v4216_v58  ;;  %v4299_v57 = vld [vmem:[#allocation13 + $0x194] ss:$8 sps:$4 sm:$0xff]   ;;  %v4297_v58 = vld [vmem:[#allocation13 + $0x190] ss:$8 sps:$4 sm:$0xff]  }
 0x268   :  { %1453 = vmatprep.subr.bf16.mxu0 %v4221_v60  ;;  %1410 = vmatprep.subr.bf16.mxu1 %v4224_v61  ;;  %v4300_v60 = vld [vmem:[#allocation13 + $0x90] ss:$8 sps:$4 sm:$0xff]   ;;  %v4305_v61 = vld [vmem:[#allocation13 + $0x184] ss:$8 sps:$4 sm:$0xff]  }
 0x26b   :  { %1454 = vmatpush1.bf16.msra.mxu0 %v4219_v62  ;;  %1411 = vmatpush1.bf16.msra.mxu1 %v4222_v63  ;;  %v4303_v62 = vld [vmem:[#allocation13 + $0x180] ss:$8 sps:$4 sm:$0xff]   ;;  %v4308_v63 = vld [vmem:[#allocation13 + $0x84] ss:$8 sps:$4 sm:$0xff]  }
 0x26c   :  { %1455 = vmatprep.subr.bf16.mxu0 %v4227_v1  ;;  %1412 = vmatprep.subr.bf16.mxu1 %v4230_v2  ;;  %v4306_v1 = vld [vmem:[#allocation13 + $0x80] ss:$8 sps:$4 sm:$0xff]  }
 0x26d   :  { %v4311_v2 = vld [vmem:[%s5705_s11 + $0x11c] ss:$20 sps:$4 sm:$0xff]  }
 0x26f   :  { %1456 = vmatpush1.bf16.msra.mxu0 %v4225_v3  ;;  %1413 = vmatpush1.bf16.msra.mxu1 %v4228_v4  ;;  %v4373_v3 = vld [vmem:[%s5703_s9 + $0x78] sm:$0xff]   ;;  %v5177_v4 = vsub.s32 3, %v5147_v28 }
 0x270   :  { %1457 = vmatprep.subr.bf16.mxu0 %v4233_v5  ;;  %1414 = vmatprep.subr.bf16.mxu1 %v4236_v6  ;;  %v493_v5 = vpop.f32.mrf.mxu0  ;;  %v572_v6 = vld [vmem:[#allocation12] sm:$0xf] }
 0x273   :  { %1458 = vmatpush1.bf16.msra.mxu0 %v4231_v7  ;;  %1415 = vmatpush1.bf16.msra.mxu1 %v4234_v8 }
 0x274   :  { %1459 = vmatprep.subr.bf16.mxu0 %v4239_v9  ;;  %1416 = vmatprep.subr.bf16.mxu1 %v4242_v10  ;;  %v581_v9 = vrot.slane %v572_v6, %v5155_v31  ;;  %v589_v10 = vrot.slane %v572_v6, %v5177_v4 }
 0x277   :  { %1460 = vmatpush1.bf16.msra.mxu0 %v4237_v11  ;;  %1417 = vmatpush1.bf16.msra.mxu1 %v4240_v13  ;;  %v361_v11 = vrot.slane %v5152_v30, %v5177_v4  ;;  %v577_v13 = vrot.slane %v572_v6, %v5158_v32 }
 0x278   :  { %1461 = vmatprep.subr.bf16.mxu0 %v4245_v14  ;;  %1418 = vmatprep.subr.bf16.mxu1 %v4248_v15  ;;  %v585_v14 = vrot.slane %v572_v6, %v5150_v29  ;;  %v4326_v6 = vld [vmem:[%s5705_s11 + $0x54] ss:$20 sps:$4 sm:$0xff]  }
 0x27b   :  { %1462 = vmatpush1.bf16.msra.mxu0 %v4243_v16  ;;  %1419 = vmatpush1.bf16.msra.mxu1 %v4246_v17  ;;  %v494_v17 = vadd.f32 %v493_v5, %v361_v11  ;;  %v4321_v5 = vld [vmem:[%s5705_s11 + $0x78] ss:$20 sps:$4 sm:$0xff]  }
 0x27c   :  { %1463 = vmatprep.subr.bf16.mxu0 %v4251_v18  ;;  %1420 = vmatprep.subr.bf16.mxu1 %v4254_v19 }
 0x27f   :  { %1464 = vmatpush1.bf16.msra.mxu0 %v4249_v20  ;;  %1421 = vmatpush1.bf16.msra.mxu1 %v4252_v21 }
 0x280   :  { %1465 = vmatprep.subr.bf16.mxu0 %v4257_v22  ;;  %1422 = vmatprep.subr.bf16.mxu1 %v4260_v23 }
 0x283   :  { %1466 = vmatpush1.bf16.msra.mxu0 %v4255_v24  ;;  %1423 = vmatpush1.bf16.msra.mxu1 %v4258_v25 }
 0x284   :  { %1467 = vmatprep.subr.bf16.mxu0 %v4263_v26  ;;  %1424 = vmatprep.subr.bf16.mxu1 %v4266_v27 }
 0x287   :  { %1468 = vmatpush2.bf16.msra.mxu0 %v4261_v33  ;;  %1425 = vmatpush2.bf16.msra.mxu1 %v4264_v34  ;;  %v490_v33 = vadd.f32 %v5166_v39, %v361_v11  ;;  %v4330_v11 = vld [vmem:[%s5705_s11] ss:$20 sps:$4 sm:$0xff]  }
 0x288   :  { %1469 = vmatprep.subr.bf16.mxu0 %v4269_v35  ;;  %1426 = vmatprep.subr.bf16.mxu1 %v4272_v36  ;;  %v503_v35 = vmax.f32 %v494_v17, 0.0  ;;  %v4341_v17 = vld [vmem:[%s5705_s11 + $0x20c] ss:$20 sps:$4 sm:$0xff]  }
 0x28b   :  { %1470 = vmatpush2.bf16.msra.mxu0 %v4267_v37  ;;  %1427 = vmatpush2.bf16.msra.mxu1 %v4270_v38 }
 0x28c   :  { %1471 = vmatprep.subr.bf16.mxu0 %v4275_v40  ;;  %1428 = vmatprep.subr.bf16.mxu1 %v4278_v41 }
 0x28f   :  { %1472 = vmatpush2.bf16.msra.mxu0 %v4273_v42  ;;  %1429 = vmatpush2.bf16.msra.mxu1 %v4276_v43 }
 0x290   :  { %1473 = vmatprep.subr.bf16.mxu0 %v4281_v44  ;;  %1430 = vmatprep.subr.bf16.mxu1 %v4284_v45  ;;  %v499_v45 = vmax.f32 %v490_v33, 0.0  ;;  %v4354_v33 = vld [vmem:[%s5705_s11 + $0x140] ss:$20 sps:$4 sm:$0xff]  }
 0x293   :  { %1474 = vmatpush2.bf16.msra.mxu0 %v4279_v46  ;;  %1431 = vmatpush2.bf16.msra.mxu1 %v4282_v47 }
 0x294   :  { %1475 = vmatprep.subr.bf16.mxu0 %v4287_v48  ;;  %1432 = vmatprep.subr.bf16.mxu1 %v4290_v49  ;;  %v4309_v48 = vld [vmem:[%s5705_s11 + $0x118] ss:$20 sps:$4 sm:$0xff]  }
 0x297   :  { %1476 = vmatpush2.bf16.msra.mxu0 %v4285_v50  ;;  %1433 = vmatpush2.bf16.msra.mxu1 %v4288_v51  ;;  %v4314_v50 = vld [vmem:[%s5705_s11 + $0xf4] ss:$20 sps:$4 sm:$0xff]   ;;  %v4374_v51 = vld [vmem:[%s5703_s9 + $0x38] sm:$0xff]  }
 0x298   :  { %1477 = vmatprep.subr.bf16.mxu0 %v4293_v52  ;;  %1434 = vmatprep.subr.bf16.mxu1 %v4296_v55  ;;  %v5195_v52 = vpack.c.bf16 %v503_v35, %v499_v45  ;;  %v4312_v55 = vld [vmem:[%s5705_s11 + $0xf0] ss:$20 sps:$4 sm:$0xff]   ;;  %v4359_v35 = vld [vmem:[%s5705_s11 + $0x240] ss:$20 sps:$4 sm:$0xff]   ;;  %v4386_v45 = vld [vmem:[%s5703_s9 + $0x8] sm:$0xff]  }
 0x29b   :  { %1478 = vmatpush2.bf16.msra.mxu0 %v4291_v54  ;;  %1435 = vmatpush2.bf16.msra.mxu1 %v4294_v56  ;;  %v4375_v54 = vld [vmem:[%s5703_s9 + $0x70] sm:$0xff]   ;;  %v4317_v56 = vld [vmem:[%s5705_s11 + $0xcc] ss:$20 sps:$4 sm:$0xff]  }
 0x29c   :  { %1479 = vmatprep.subr.bf16.mxu0 %v4299_v57  ;;  %1436 = vmatprep.subr.bf16.mxu1 %v4302_v59  ;;  %v4376_v57 = vld [vmem:[%s5703_s9 + $0x30] sm:$0xff]   ;;  %v4315_v59 = vld [vmem:[%s5705_s11 + $0xc8] ss:$20 sps:$4 sm:$0xff]  }
 0x29f   :  { %1480 = vmatpush2.bf16.msra.mxu0 %v4297_v58  ;;  %1437 = vmatpush2.bf16.msra.mxu1 %v4300_v60  ;;  %v4377_v58 = vld [vmem:[%s5703_s9 + $0x68] sm:$0xff]   ;;  %v4320_v60 = vld [vmem:[%s5705_s11 + $0xa4] ss:$20 sps:$4 sm:$0xff]  }
 0x2a0   :  { %1481 = vmatprep.subr.bf16.mxu0 %v4305_v61  ;;  %1438 = vmatprep.subr.bf16.mxu1 %v4308_v63  ;;  %v4378_v61 = vld [vmem:[%s5703_s9 + $0x28] sm:$0xff]   ;;  %v4318_v63 = vld [vmem:[%s5705_s11 + $0xa0] ss:$20 sps:$4 sm:$0xff]  }
 0x2a3   :  { %1482 = vmatpush2.bf16.msra.mxu0 %v4303_v62  ;;  %1439 = vmatpush2.bf16.msra.mxu1 %v4306_v1  ;;  %v4379_v62 = vld [vmem:[%s5703_s9 + $0x60] sm:$0xff]   ;;  %v4323_v1 = vld [vmem:[%s5705_s11 + $0x7c] ss:$20 sps:$4 sm:$0xff]  }
 0x2a4   :  { %2226 = vmatprep.subr.bf16.mxu0 %v4311_v2  ;;  %3993 = vmatprep.subr.bf16.mxu1 %v4373_v3  ;;  %v4380_v2 = vld [vmem:[%s5703_s9 + $0x20] sm:$0xff]   ;;  %v4381_v3 = vld [vmem:[%s5703_s9 + $0x58] sm:$0xff]  }
 0x326   :  { %v948_v7 = vpop.f32.mrf.mxu1  ;;  %v991_v8 = vpop.f32.mrf.mxu0 }
 0x327   :  { %v949_v24 = vadd.f32 %v948_v7, %v577_v13  ;;  %v992_v25 = vadd.f32 %v991_v8, %v585_v14  ;;  %v4324_v7 = vld [vmem:[%s5705_s11 + $0x50] ss:$20 sps:$4 sm:$0xff]   ;;  %v4329_v8 = vld [vmem:[%s5705_s11 + $0x2c] ss:$20 sps:$4 sm:$0xff]  }
 0x328   :  { %v950_v15 = vpop.f32.mrf.mxu1  ;;  %v993_v16 = vpop.f32.mrf.mxu0 }
 0x329   :  { %v951_v20 = vadd.f32 %v950_v15, %v581_v9  ;;  %v994_v21 = vadd.f32 %v993_v16, %v589_v10  ;;  %v1000_v43 = vmax.f32 %v949_v24, 0.0  ;;  %v1002_v44 = vmax.f32 %v992_v25, 0.0  ;;  %v4338_v15 = vld [vmem:[%s5705_s11 + $0x234] ss:$20 sps:$4 sm:$0xff]   ;;  %v4336_v16 = vld [vmem:[%s5705_s11 + $0x230] ss:$20 sps:$4 sm:$0xff]  }
 0x32a   :  { %v952_v18 = vpop.f32.mrf.mxu1  ;;  %v995_v19 = vpop.f32.mrf.mxu0  ;;  %v4348_v24 = vld [vmem:[%s5705_s11 + $0x190] ss:$20 sps:$4 sm:$0xff]   ;;  %v4353_v25 = vld [vmem:[%s5705_s11 + $0x16c] ss:$20 sps:$4 sm:$0xff]  }
 0x32b   :  { %v953_v22 = vadd.f32 %v952_v18, %v577_v13  ;;  %v996_v23 = vadd.f32 %v995_v19, %v585_v14  ;;  %v1001_v38 = vmax.f32 %v951_v20, 0.0  ;;  %v1003_v40 = vmax.f32 %v994_v21, 0.0  ;;  %v4335_v13 = vld [vmem:[%s5705_s11 + $0x25c] ss:$20 sps:$4 sm:$0xff]   ;;  %v4333_v14 = vld [vmem:[%s5705_s11 + $0x258] ss:$20 sps:$4 sm:$0xff]  }
 0x32c   :  { %v954_v26 = vpop.f32.mrf.mxu1  ;;  %v997_v27 = vpop.f32.mrf.mxu0  ;;  %v4339_v18 = vld [vmem:[%s5705_s11 + $0x208] ss:$20 sps:$4 sm:$0xff]   ;;  %v4344_v19 = vld [vmem:[%s5705_s11 + $0x1e4] ss:$20 sps:$4 sm:$0xff]   ;;  %v4342_v20 = vld [vmem:[%s5705_s11 + $0x1e0] ss:$20 sps:$4 sm:$0xff]  }
 0x32d   :  { %v955_v30 = vadd.f32 %v954_v26, %v581_v9  ;;  %v998_v34 = vadd.f32 %v997_v27, %v589_v10  ;;  %v1004_v36 = vmax.f32 %v953_v22, 0.0  ;;  %v1006_v37 = vmax.f32 %v996_v23, 0.0  ;;  %v4327_v9 = vld [vmem:[%s5705_s11 + $0x28] ss:$20 sps:$4 sm:$0xff]   ;;  %v4332_v10 = vld [vmem:[%s5705_s11 + $0x4] ss:$20 sps:$4 sm:$0xff]  }
 0x32e   :  { %v4347_v21 = vld [vmem:[%s5705_s11 + $0x1bc] ss:$20 sps:$4 sm:$0xff]   ;;  %v4345_v22 = vld [vmem:[%s5705_s11 + $0x1b8] ss:$20 sps:$4 sm:$0xff]   ;;  %v4350_v23 = vld [vmem:[%s5705_s11 + $0x194] ss:$20 sps:$4 sm:$0xff]  }
 0x32f   :  { %v1005_v41 = vmax.f32 %v955_v30, 0.0  ;;  %v1007_v42 = vmax.f32 %v998_v34, 0.0  ;;  %v1008_v49 = vpack.c.bf16 %v1004_v36, %v1000_v43  ;;  %v1010_v39 = vpack.c.bf16 %v1006_v37, %v1002_v44  ;;  %v4351_v26 = vld [vmem:[%s5705_s11 + $0x168] ss:$20 sps:$4 sm:$0xff]   ;;  %v4356_v27 = vld [vmem:[%s5705_s11 + $0x144] ss:$20 sps:$4 sm:$0xff]  }
 0x330   :  { %v4357_v30 = vld [vmem:[%s5705_s11 + $0x268] ss:$20 sps:$4 sm:$0xff]   ;;  %v4360_v37 = vld [vmem:[%s5705_s11 + $0x100] ss:$20 sps:$4 sm:$0xff]   ;;  %v4363_v43 = vld [vmem:[%s5705_s11 + $0x1f0] ss:$20 sps:$4 sm:$0xff]  }
 0x331   :  { %v1009_v46 = vpack.c.bf16 %v1005_v41, %v1001_v38  ;;  %v1011_v47 = vpack.c.bf16 %v1007_v42, %v1003_v40  ;;  %v4358_v34 = vld [vmem:[%s5705_s11 + $0x128] ss:$20 sps:$4 sm:$0xff]   ;;  %v4361_v38 = vld [vmem:[%s5705_s11 + $0x218] ss:$20 sps:$4 sm:$0xff]   ;;  %v4383_v40 = vld [vmem:[%s5703_s9 + $0x50] sm:$0xff]  }
 0x332   :  { %v4382_v36 = vld [vmem:[%s5703_s9 + $0x18] sm:$0xff]   ;;  %v4384_v41 = vld [vmem:[%s5703_s9 + $0x10] sm:$0xff]   ;;  %v4385_v44 = vld [vmem:[%s5703_s9 + $0x48] sm:$0xff]  }
 0x333   :  { %1440 = vmatprep.mubr.bf16.mxu1 %v1009_v46  ;;  %1483 = vmatprep.mubr.bf16.mxu0 %v1011_v47  ;;  %v4362_v42 = vld [vmem:[%s5705_s11 + $0xd8] ss:$20 sps:$4 sm:$0xff]   ;;  %v4364_v46 = vld [vmem:[%s5705_s11 + $0xb0] ss:$20 sps:$4 sm:$0xff]   ;;  %v4365_v47 = vld [vmem:[%s5705_s11 + $0x1c8] ss:$20 sps:$4 sm:$0xff]  }
 0x334   :  { %1441 = vmatmul.mubr.bf16.vlgmr.msra.gmra.mxu1 %v1008_v49  ;;  %1484 = vmatmul.mubr.bf16.vlgmr.msra.gmra.mxu0 %v1010_v39  ;;  %v4388_v49 = vld [vmem:[%s5703_s9] sm:$0xff]   ;;  %v4366_v39 = vld [vmem:[%s5705_s11 + $0x88] ss:$20 sps:$4 sm:$0xff]  }
 0x335   :  { %2227 = vmatpush1.bf16.msra.mxu0 %v4309_v48  ;;  %2258 = vmatprep.mubr.bf16.mxu0 %v5195_v52  ;;  %v4387_v48 = vld [vmem:[%s5703_s9 + $0x40] sm:$0xff]   ;;  %s5745_s9 = sld [smem:[#allocation43_spill]] }
 0x336   :  { %2228 = vmatprep.subr.bf16.mxu0 %v4314_v50  ;;  %3994 = vmatpush3.bf16.msra.mxu1 %v4374_v51  ;;  %v4367_v50 = vld [vmem:[%s5705_s11 + $0x1a0] ss:$20 sps:$4 sm:$0xff]   ;;  %v4391_v51 = vld [vmem:[%s5705_s11 + $0x124] ss:$20 sps:$4 sm:$0xff]  }
 0x337   :  { %3995 = vmatprep.subr.bf16.mxu1 %v4375_v54  ;;  %v4368_v54 = vld [vmem:[%s5705_s11 + $0x60] ss:$20 sps:$4 sm:$0xff]  }
 0x339   :  { %2229 = vmatpush1.bf16.msra.mxu0 %v4312_v55  ;;  %v4369_v55 = vld [vmem:[%s5705_s11 + $0x178] ss:$20 sps:$4 sm:$0xff]  }
 0x33a   :  { %2230 = vmatprep.subr.bf16.mxu0 %v4317_v56  ;;  %3996 = vmatpush3.bf16.msra.mxu1 %v4376_v57  ;;  %v4370_v56 = vld [vmem:[%s5705_s11 + $0x38] ss:$20 sps:$4 sm:$0xff]   ;;  %v4371_v57 = vld [vmem:[%s5705_s11 + $0x150] ss:$20 sps:$4 sm:$0xff]  }
 0x33b   :  { %3997 = vmatprep.subr.bf16.mxu1 %v4377_v58  ;;  %v4372_v58 = vld [vmem:[%s5705_s11 + $0x10] ss:$20 sps:$4 sm:$0xff]  }
 0x33d   :  { %2231 = vmatpush1.bf16.msra.mxu0 %v4315_v59  ;;  %v1076_v59 = vld [vmem:[#allocation15] sm:$0x3] }
 0x33e   :  { %2232 = vmatprep.subr.bf16.mxu0 %v4320_v60  ;;  %3998 = vmatpush3.bf16.msra.mxu1 %v4378_v61  ;;  %v1085_v60 = vrot.slane %v1076_v59, %v5155_v31  ;;  %v1081_v61 = vrot.slane %v1076_v59, %v5158_v32  ;;  %v4433_v59 = vld [vmem:[%s5705_s11 + $0x174] ss:$20 sps:$4 sm:$0xff]  }
 0x33f   :  { %3999 = vmatprep.subr.bf16.mxu1 %v4379_v62 }
 0x341   :  { %2233 = vmatpush1.bf16.msra.mxu0 %v4318_v63 }
 0x342   :  { %2234 = vmatprep.subr.bf16.mxu0 %v4323_v1  ;;  %4000 = vmatpush3.bf16.msra.mxu1 %v4380_v2 }
 0x343   :  { %4001 = vmatprep.subr.bf16.mxu1 %v4381_v3 }
 0x345   :  { %2235 = vmatpush1.bf16.msra.mxu0 %v4321_v5 }
 0x346   :  { %2236 = vmatprep.subr.bf16.mxu0 %v4326_v6  ;;  %4002 = vmatpush3.bf16.msra.mxu1 %v4382_v36  ;;  %v4404_v36 = vld [vmem:[%s5705_s11 + $0x58] ss:$20 sps:$4 sm:$0xff]  }
 0x347   :  { %4003 = vmatprep.subr.bf16.mxu1 %v4383_v40  ;;  %v4412_v40 = vld [vmem:[%s5705_s11 + $0xc] ss:$20 sps:$4 sm:$0xff]  }
 0x349   :  { %2237 = vmatpush1.bf16.msra.mxu0 %v4324_v7 }
 0x34a   :  { %2238 = vmatprep.subr.bf16.mxu0 %v4329_v8  ;;  %4004 = vmatpush3.bf16.msra.mxu1 %v4384_v41  ;;  %v4410_v41 = vld [vmem:[%s5705_s11 + $0x8] ss:$20 sps:$4 sm:$0xff]  }
 0x34b   :  { %4005 = vmatprep.subr.bf16.mxu1 %v4385_v44  ;;  %v4418_v44 = vld [vmem:[%s5705_s11 + $0x23c] ss:$20 sps:$4 sm:$0xff]  }
 0x34d   :  { %2239 = vmatpush1.bf16.msra.mxu0 %v4327_v9 }
 0x34e   :  { %2240 = vmatprep.subr.bf16.mxu0 %v4332_v10  ;;  %4006 = vmatpush3.bf16.msra.mxu1 %v4386_v45  ;;  %v4416_v45 = vld [vmem:[%s5705_s11 + $0x238] ss:$20 sps:$4 sm:$0xff]  }
 0x34f   :  { %4007 = vmatprep.subr.bf16.mxu1 %v4387_v48  ;;  %v4424_v48 = vld [vmem:[%s5705_s11 + $0x1ec] ss:$20 sps:$4 sm:$0xff]  }
 0x351   :  { %2241 = vmatpush1.bf16.msra.mxu0 %v4330_v11 }
 0x352   :  { %2242 = vmatprep.subr.bf16.mxu0 %v4335_v13  ;;  %4008 = vmatpush3.bf16.msra.mxu1 %v4388_v49  ;;  %v4422_v49 = vld [vmem:[%s5705_s11 + $0x1e8] ss:$20 sps:$4 sm:$0xff]  }
 0x353   :  { %2269 = vmatprep.subr.bf16.mxu1 %v4391_v51  ;;  %v4425_v51 = vld [vmem:[%s5705_s11 + $0x1c0] ss:$20 sps:$4 sm:$0xff]  }
 0x355   :  { %2243 = vmatpush2.bf16.msra.mxu0 %v4333_v14 }
 0x356   :  { %2244 = vmatprep.subr.bf16.mxu0 %v4338_v15 }
 0x359   :  { %2245 = vmatpush2.bf16.msra.mxu0 %v4336_v16 }
 0x35a   :  { %2246 = vmatprep.subr.bf16.mxu0 %v4341_v17 }
 0x35d   :  { %2247 = vmatpush2.bf16.msra.mxu0 %v4339_v18 }
 0x35e   :  { %2248 = vmatprep.subr.bf16.mxu0 %v4344_v19 }
 0x361   :  { %2249 = vmatpush2.bf16.msra.mxu0 %v4342_v20 }
 0x362   :  { %2250 = vmatprep.subr.bf16.mxu0 %v4347_v21 }
 0x365   :  { %2251 = vmatpush2.bf16.msra.mxu0 %v4345_v22  ;;  %v4389_v22 = vld [vmem:[%s5705_s11 + $0x120] ss:$20 sps:$4 sm:$0xff]  }
 0x366   :  { %2252 = vmatprep.subr.bf16.mxu0 %v4350_v23 }
 0x369   :  { %2253 = vmatpush2.bf16.msra.mxu0 %v4348_v24  ;;  %v4394_v24 = vld [vmem:[%s5705_s11 + $0xfc] ss:$20 sps:$4 sm:$0xff]  }
 0x36a   :  { %2254 = vmatprep.subr.bf16.mxu0 %v4353_v25  ;;  %v4392_v25 = vld [vmem:[%s5705_s11 + $0xf8] ss:$20 sps:$4 sm:$0xff]  }
 0x36d   :  { %2255 = vmatpush2.bf16.msra.mxu0 %v4351_v26  ;;  %v4397_v26 = vld [vmem:[%s5705_s11 + $0xd4] ss:$20 sps:$4 sm:$0xff]  }
 0x36e   :  { %2256 = vmatprep.subr.bf16.mxu0 %v4356_v27  ;;  %v4395_v27 = vld [vmem:[%s5705_s11 + $0xd0] ss:$20 sps:$4 sm:$0xff]  }
 0x371   :  { %2257 = vmatpush2.bf16.msra.mxu0 %v4354_v33  ;;  %v4400_v33 = vld [vmem:[%s5705_s11 + $0xac] ss:$20 sps:$4 sm:$0xff]  }
 0x372   :  { %4015 = vmatprep.subr.bf16.mxu0 %v4357_v30  ;;  %v4403_v30 = vld [vmem:[%s5705_s11 + $0x84] ss:$20 sps:$4 sm:$0xff]  }
 0x374   :  { %2259 = vmatmul.mubr.bf16.vlgmr.msra.gmra.mxu0 %v5168_v53 }
 0x375   :  { %4016 = vmatpush3.bf16.msra.mxu0 %v4358_v34  ;;  %2344 = vmatprep.mubr.bf16.mxu0 %v5195_v52  ;;  %v4401_v34 = vld [vmem:[%s5705_s11 + $0x80] ss:$20 sps:$4 sm:$0xff]  }
 0x376   :  { %4017 = vmatprep.subr.bf16.mxu0 %v4359_v35  ;;  %v4406_v35 = vld [vmem:[%s5705_s11 + $0x5c] ss:$20 sps:$4 sm:$0xff]  }
 0x379   :  { %4018 = vmatpush3.bf16.msra.mxu0 %v4360_v37  ;;  %v4409_v37 = vld [vmem:[%s5705_s11 + $0x34] ss:$20 sps:$4 sm:$0xff]  }
 0x37a   :  { %4019 = vmatprep.subr.bf16.mxu0 %v4361_v38  ;;  %v4407_v38 = vld [vmem:[%s5705_s11 + $0x30] ss:$20 sps:$4 sm:$0xff]  }
 0x37d   :  { %4020 = vmatpush3.bf16.msra.mxu0 %v4362_v42  ;;  %v4415_v42 = vld [vmem:[%s5705_s11 + $0x264] ss:$20 sps:$4 sm:$0xff]  }
 0x37e   :  { %4021 = vmatprep.subr.bf16.mxu0 %v4363_v43  ;;  %v4413_v43 = vld [vmem:[%s5705_s11 + $0x260] ss:$20 sps:$4 sm:$0xff]  }
 0x381   :  { %4022 = vmatpush3.bf16.msra.mxu0 %v4364_v46  ;;  %v4421_v46 = vld [vmem:[%s5705_s11 + $0x214] ss:$20 sps:$4 sm:$0xff]  }
 0x382   :  { %4023 = vmatprep.subr.bf16.mxu0 %v4365_v47  ;;  %v4419_v47 = vld [vmem:[%s5705_s11 + $0x210] ss:$20 sps:$4 sm:$0xff]  }
 0x385   :  { %4024 = vmatpush3.bf16.msra.mxu0 %v4366_v39  ;;  %v4427_v39 = vld [vmem:[%s5705_s11 + $0x1c4] ss:$20 sps:$4 sm:$0xff]  }
 0x386   :  { %4025 = vmatprep.subr.bf16.mxu0 %v4367_v50  ;;  %v5456_v50 = vld [vmem:[#allocation18] sm:$0x1f] }
 0x389   :  { %4026 = vmatpush3.bf16.msra.mxu0 %v4368_v54  ;;  %v4430_v54 = vld [vmem:[%s5705_s11 + $0x19c] ss:$20 sps:$4 sm:$0xff]  }
 0x38a   :  { %4027 = vmatprep.subr.bf16.mxu0 %v4369_v55  ;;  %v1788_v55 = vrot.slane %v5456_v50, %v5158_v32 }
 0x38d   :  { %4028 = vmatpush3.bf16.msra.mxu0 %v4370_v56 }
 0x38e   :  { %4029 = vmatprep.subr.bf16.mxu0 %v4371_v57  ;;  %v4428_v57 = vld [vmem:[%s5705_s11 + $0x198] ss:$20 sps:$4 sm:$0xff]  }
 0x391   :  { %4030 = vmatpush3.bf16.msra.mxu0 %v4372_v58 }
 0x394   :  { %2345 = vmatmul.mubr.bf16.vlgmr.msra.gmra.mxu0 %v5168_v53 }
 0x3f4   :  { %v1442_v62 = vpop.f32.mrf.mxu1  ;;  %v1485_v63 = vpop.f32.mrf.mxu0 }
 0x3f5   :  { %v1443_v5 = vadd.f32 %v1442_v62, %v1081_v61  ;;  %v1792_v62 = vrot.slane %v5456_v50, %v5155_v31 }
 0x3f6   :  { %v1444_v1 = vpop.f32.mrf.mxu1  ;;  %v1487_v2 = vpop.f32.mrf.mxu0 }
 0x3f7   :  { %v1445_v3 = vadd.f32 %v1444_v1, %v1085_v60  ;;  %v1486_v14 = vadd.f32 %v1485_v63, %v1443_v5  ;;  %v4431_v1 = vld [vmem:[%s5705_s11 + $0x170] ss:$20 sps:$4 sm:$0xff]  }
 0x3f8   :  { %v1446_v6 = vpop.f32.mrf.mxu1  ;;  %v1489_v7 = vpop.f32.mrf.mxu0 }
 0x3f9   :  { %v1447_v8 = vadd.f32 %v1446_v6, %v1081_v61  ;;  %v1488_v10 = vadd.f32 %v1487_v2, %v1445_v3  ;;  %v1494_v20 = vmax.f32 %v1486_v14, 0.0  ;;  %v4436_v3 = vld [vmem:[%s5705_s11 + $0x14c] ss:$20 sps:$4 sm:$0xff]  }
 0x3fa   :  { %v1448_v9 = vpop.f32.mrf.mxu1  ;;  %v1491_v15 = vpop.f32.mrf.mxu0 }
 0x3fb   :  { %v1490_v11 = vadd.f32 %v1489_v7, %v1447_v8  ;;  %v1449_v13 = vadd.f32 %v1448_v9, %v1085_v60  ;;  %v1495_v18 = vmax.f32 %v1488_v10, 0.0  ;;  %v4434_v10 = vld [vmem:[%s5705_s11 + $0x148] ss:$20 sps:$4 sm:$0xff]  }
 0x3fd   :  { %v1492_v16 = vadd.f32 %v1491_v15, %v1449_v13  ;;  %v1496_v17 = vmax.f32 %v1490_v11, 0.0  ;;  %v4439_v11 = vld [vmem:[#allocation19 + $0x74] ss:$8 sps:$4 sm:$0xff]   ;;  %v4437_v15 = vld [vmem:[#allocation19 + $0x70] ss:$8 sps:$4 sm:$0xff]  }
 0x3ff   :  { %v1497_v19 = vmax.f32 %v1492_v16, 0.0  ;;  %v1498_v23 = vpack.c.bf16 %v1496_v17, %v1494_v20  ;;  %v4442_v16 = vld [vmem:[#allocation19 + $0x64] ss:$8 sps:$4 sm:$0xff]   ;;  %v4443_v20 = vld [vmem:[#allocation19 + $0x50] ss:$8 sps:$4 sm:$0xff]  }
 0x401   :  { %v1499_v21 = vpack.c.bf16 %v1497_v19, %v1495_v18  ;;  %v4440_v18 = vld [vmem:[#allocation19 + $0x60] ss:$8 sps:$4 sm:$0xff]   ;;  %v4445_v19 = vld [vmem:[#allocation19 + $0x54] ss:$8 sps:$4 sm:$0xff]  }
 0x403   :  { %1667 = vmatprep.mubr.bf16.mxu1 %v1499_v21  ;;  %v4448_v21 = vld [vmem:[#allocation19 + $0x44] ss:$8 sps:$4 sm:$0xff]  }
 0x404   :  { %1668 = vmatmul.mubr.bf16.vlgmr.msra.gmra.mxu1 %v1498_v23  ;;  %v4451_v23 = vld [vmem:[#allocation19 + $0x34] ss:$8 sps:$4 sm:$0xff]  }
 0x405   :  { %2270 = vmatpush1.bf16.msra.mxu1 %v4389_v22  ;;  %2301 = vmatprep.mubr.bf16.mxu1 %v5195_v52  ;;  %v4398_v52 = vld [vmem:[%s5705_s11 + $0xa8] ss:$20 sps:$4 sm:$0xff]   ;;  %v4446_v22 = vld [vmem:[#allocation19 + $0x40] ss:$8 sps:$4 sm:$0xff]  }
 0x406   :  { %2271 = vmatprep.subr.bf16.mxu1 %v4394_v24  ;;  %v4511_v24 = vld [vmem:[#allocation19 + $0x174] ss:$8 sps:$4 sm:$0xff]  }
 0x407   :  { %2903 = vmatprep.subr.bf16.mxu0 %v4511_v24  ;;  %v4493_v24 = vld [vmem:[#allocation19 + $0x254] ss:$8 sps:$4 sm:$0xff]  }
 0x409   :  { %2272 = vmatpush1.bf16.msra.mxu1 %v4392_v25  ;;  %v4449_v25 = vld [vmem:[#allocation19 + $0x30] ss:$8 sps:$4 sm:$0xff]  }
 0x40a   :  { %2273 = vmatprep.subr.bf16.mxu1 %v4397_v26  ;;  %v4509_v26 = vld [vmem:[#allocation19 + $0x170] ss:$8 sps:$4 sm:$0xff]  }
 0x40b   :  { %2904 = vmatpush1.bf16.msra.mxu0 %v4509_v26  ;;  %v4553_v26 = vld [vmem:[#allocation19 + $0x194] ss:$8 sps:$4 sm:$0xff]  }
 0x40d   :  { %2274 = vmatpush1.bf16.msra.mxu1 %v4395_v27  ;;  %v4514_v27 = vld [vmem:[#allocation19 + $0x164] ss:$8 sps:$4 sm:$0xff]  }
 0x40e   :  { %2275 = vmatprep.subr.bf16.mxu1 %v4400_v33  ;;  %v4512_v33 = vld [vmem:[#allocation19 + $0x160] ss:$8 sps:$4 sm:$0xff]   ;;  %2905 = vmatprep.subr.bf16.mxu0 %v4514_v27  ;;  %v4491_v27 = vld [vmem:[#allocation19 + $0x250] ss:$8 sps:$4 sm:$0xff]  }
 0x40f   :  { %2906 = vmatpush1.bf16.msra.mxu0 %v4512_v33  ;;  %v4496_v33 = vld [vmem:[#allocation19 + $0x244] ss:$8 sps:$4 sm:$0xff]  }
 0x411   :  { %2276 = vmatpush1.bf16.msra.mxu1 %v4398_v52  ;;  %v4517_v52 = vld [vmem:[#allocation19 + $0x154] ss:$8 sps:$4 sm:$0xff]  }
 0x412   :  { %2277 = vmatprep.subr.bf16.mxu1 %v4403_v30  ;;  %v4452_v30 = vld [vmem:[#allocation19 + $0x20] ss:$8 sps:$4 sm:$0xff]   ;;  %2907 = vmatprep.subr.bf16.mxu0 %v4517_v52 }
 0x415   :  { %2278 = vmatpush1.bf16.msra.mxu1 %v4401_v34  ;;  %v4457_v34 = vld [vmem:[#allocation19 + $0x14] ss:$8 sps:$4 sm:$0xff]  }
 0x416   :  { %2279 = vmatprep.subr.bf16.mxu1 %v4406_v35  ;;  %v4515_v35 = vld [vmem:[#allocation19 + $0x150] ss:$8 sps:$4 sm:$0xff]  }
 0x417   :  { %2908 = vmatpush1.bf16.msra.mxu0 %v4515_v35  ;;  %v4499_v35 = vld [vmem:[#allocation19 + $0x234] ss:$8 sps:$4 sm:$0xff]  }
 0x419   :  { %2280 = vmatpush1.bf16.msra.mxu1 %v4404_v36  ;;  %v4520_v36 = vld [vmem:[#allocation19 + $0x144] ss:$8 sps:$4 sm:$0xff]  }
 0x41a   :  { %2281 = vmatprep.subr.bf16.mxu1 %v4409_v37  ;;  %v4455_v37 = vld [vmem:[#allocation19 + $0x10] ss:$8 sps:$4 sm:$0xff]   ;;  %2909 = vmatprep.subr.bf16.mxu0 %v4520_v36 }
 0x41d   :  { %2282 = vmatpush1.bf16.msra.mxu1 %v4407_v38  ;;  %v4460_v38 = vld [vmem:[#allocation19 + $0x4] ss:$8 sps:$4 sm:$0xff]  }
 0x41e   :  { %2283 = vmatprep.subr.bf16.mxu1 %v4412_v40  ;;  %v4518_v40 = vld [vmem:[#allocation19 + $0x140] ss:$8 sps:$4 sm:$0xff]  }
 0x41f   :  { %2910 = vmatpush1.bf16.msra.mxu0 %v4518_v40 }
 0x421   :  { %2284 = vmatpush1.bf16.msra.mxu1 %v4410_v41  ;;  %v4523_v41 = vld [vmem:[#allocation19 + $0x134] ss:$8 sps:$4 sm:$0xff]  }
 0x422   :  { %2285 = vmatprep.subr.bf16.mxu1 %v4415_v42  ;;  %v4458_v42 = vld [vmem:[#allocation19] ss:$8 sps:$4 sm:$0xff]   ;;  %2911 = vmatprep.subr.bf16.mxu0 %v4523_v41  ;;  %v1803_v41 = vsub.s32 4, %v5147_v28 }
 0x425   :  { %2286 = vmatpush2.bf16.msra.mxu1 %v4413_v43  ;;  %v4463_v43 = vld [vmem:[#allocation19 + $0xf4] ss:$8 sps:$4 sm:$0xff]  }
 0x426   :  { %2287 = vmatprep.subr.bf16.mxu1 %v4418_v44  ;;  %v4521_v44 = vld [vmem:[#allocation19 + $0x130] ss:$8 sps:$4 sm:$0xff]  }
 0x427   :  { %2912 = vmatpush1.bf16.msra.mxu0 %v4521_v44  ;;  %v4505_v44 = vld [vmem:[#allocation19 + $0x214] ss:$8 sps:$4 sm:$0xff]  }
 0x429   :  { %2288 = vmatpush2.bf16.msra.mxu1 %v4416_v45  ;;  %v4526_v45 = vld [vmem:[#allocation19 + $0x124] ss:$8 sps:$4 sm:$0xff]  }
 0x42a   :  { %2289 = vmatprep.subr.bf16.mxu1 %v4421_v46  ;;  %v4461_v46 = vld [vmem:[#allocation19 + $0xf0] ss:$8 sps:$4 sm:$0xff]   ;;  %2913 = vmatprep.subr.bf16.mxu0 %v4526_v45  ;;  %v1804_v45 = vrot.slane %v5456_v50, %v1803_v41  ;;  %v4586_v41 = vld [vmem:[%s5709_s15 + $0xe4] ss:$8 sps:$4 sm:$0xff]  }
 0x42d   :  { %2290 = vmatpush2.bf16.msra.mxu1 %v4419_v47  ;;  %v4466_v47 = vld [vmem:[#allocation19 + $0xe4] ss:$8 sps:$4 sm:$0xff]  }
 0x42e   :  { %2291 = vmatprep.subr.bf16.mxu1 %v4424_v48  ;;  %v4524_v48 = vld [vmem:[#allocation19 + $0x120] ss:$8 sps:$4 sm:$0xff]  }
 0x42f   :  { %2914 = vmatpush1.bf16.msra.mxu0 %v4524_v48 }
 0x431   :  { %2292 = vmatpush2.bf16.msra.mxu1 %v4422_v49  ;;  %v4529_v49 = vld [vmem:[#allocation19 + $0x114] ss:$8 sps:$4 sm:$0xff]  }
 0x432   :  { %2293 = vmatprep.subr.bf16.mxu1 %v4427_v39  ;;  %v4464_v39 = vld [vmem:[#allocation19 + $0xe0] ss:$8 sps:$4 sm:$0xff]   ;;  %2915 = vmatprep.subr.bf16.mxu0 %v4529_v49  ;;  %v4508_v49 = vld [vmem:[#allocation19 + $0x204] ss:$8 sps:$4 sm:$0xff]  }
 0x434   :  { %v2260_v56 = vpop.f32.mrf.mxu0 }
 0x435   :  { %2294 = vmatpush2.bf16.msra.mxu1 %v4425_v51  ;;  %v2261_v60 = vadd.f32 %v2260_v56, %v1788_v55  ;;  %v4469_v51 = vld [vmem:[#allocation19 + $0xd4] ss:$8 sps:$4 sm:$0xff]   ;;  %v4467_v56 = vld [vmem:[#allocation19 + $0xd0] ss:$8 sps:$4 sm:$0xff]  }
 0x436   :  { %v2262_v58 = vpop.f32.mrf.mxu0  ;;  %2295 = vmatprep.subr.bf16.mxu1 %v4430_v54  ;;  %v4527_v54 = vld [vmem:[#allocation19 + $0x110] ss:$8 sps:$4 sm:$0xff]  }
 0x437   :  { %v2353_v5 = vmax.f32 %v2261_v60, 0.0  ;;  %v2263_v8 = vadd.f32 %v2262_v58, %v1792_v62  ;;  %2916 = vmatpush1.bf16.msra.mxu0 %v4527_v54  ;;  %v4530_v58 = vld [vmem:[#allocation19 + $0x100] ss:$8 sps:$4 sm:$0xff]  }
 0x438   :  { %v2264_v61 = vpop.f32.mrf.mxu0  ;;  %v4470_v60 = vld [vmem:[#allocation19 + $0xc0] ss:$8 sps:$4 sm:$0xff]  }
 0x439   :  { %v2265_v63 = vadd.f32 %v2264_v61, %v1788_v55  ;;  %2296 = vmatpush2.bf16.msra.mxu1 %v4428_v57  ;;  %v2354_v14 = vmax.f32 %v2263_v8, 0.0  ;;  %v4532_v55 = vld [vmem:[#allocation19 + $0x104] ss:$8 sps:$4 sm:$0xff]   ;;  %v4475_v61 = vld [vmem:[#allocation19 + $0xb4] ss:$8 sps:$4 sm:$0xff]  }
 0x43a   :  { %v2266_v2 = vpop.f32.mrf.mxu0  ;;  %2297 = vmatprep.subr.bf16.mxu1 %v4433_v59  ;;  %v4472_v57 = vld [vmem:[#allocation19 + $0xc4] ss:$8 sps:$4 sm:$0xff]   ;;  %2917 = vmatprep.subr.bf16.mxu0 %v4532_v55  ;;  %v4535_v59 = vld [vmem:[#allocation19 + $0x1f4] ss:$8 sps:$4 sm:$0xff]   ;;  %v4539_v8 = vld [vmem:[#allocation19 + $0x1d0] ss:$8 sps:$4 sm:$0xff]  }
 0x43b   :  { %v2358_v6 = vmax.f32 %v2265_v63, 0.0  ;;  %v2267_v7 = vadd.f32 %v2266_v2, %v1792_v62  ;;  %2918 = vmatpush1.bf16.msra.mxu0 %v4530_v58  ;;  %v4533_v62 = vld [vmem:[#allocation19 + $0x1f0] ss:$8 sps:$4 sm:$0xff]   ;;  %v4538_v63 = vld [vmem:[#allocation19 + $0x1e4] ss:$8 sps:$4 sm:$0xff]  }
 0x43c   :  { %2919 = vmatprep.subr.bf16.mxu0 %v4535_v59  ;;  %v4478_v2 = vld [vmem:[#allocation19 + $0xa4] ss:$8 sps:$4 sm:$0xff]   ;;  %v3756_v59 = vld [vmem:[#allocation16] ss:$0 sm:$0xff] }
 0x43d   :  { %v5480_v9 = vpack.c.bf16 %v2358_v6, %v2353_v5  ;;  %2298 = vmatpush2.bf16.msra.mxu1 %v4431_v1  ;;  %v2359_v13 = vmax.f32 %v2267_v7, 0.0  ;;  %v4473_v1 = vld [vmem:[#allocation19 + $0xb0] ss:$8 sps:$4 sm:$0xff]   ;;  %v4541_v5 = vld [vmem:[#allocation19 + $0x1d4] ss:$8 sps:$4 sm:$0xff]  }
 0x43e   :  { %2299 = vmatprep.subr.bf16.mxu1 %v4436_v3  ;;  %v4536_v3 = vld [vmem:[#allocation19 + $0x1e0] ss:$8 sps:$4 sm:$0xff]   ;;  %v4481_v7 = vld [vmem:[#allocation19 + $0x94] ss:$8 sps:$4 sm:$0xff]  }
 0x43f   :  { %v2364_v17 = vpack.c.bf16 %v2359_v13, %v2354_v14  ;;  %2920 = vmatpush2.bf16.msra.mxu0 %v4533_v62  ;;  %v4476_v6 = vld [vmem:[#allocation19 + $0xa0] ss:$8 sps:$4 sm:$0xff]   ;;  %v4484_v13 = vld [vmem:[#allocation19 + $0x84] ss:$8 sps:$4 sm:$0xff]  }
 0x440   :  { %2921 = vmatprep.subr.bf16.mxu0 %v4538_v63  ;;  %v4542_v14 = vld [vmem:[#allocation19 + $0x1c0] ss:$8 sps:$4 sm:$0xff]  }
 0x441   :  { %2300 = vmatpush2.bf16.msra.mxu1 %v4434_v10  ;;  %v4544_v10 = vld [vmem:[#allocation19 + $0x1c4] ss:$8 sps:$4 sm:$0xff]  }
 0x442   :  { %2860 = vmatprep.subr.bf16.mxu1 %v4439_v11  ;;  %v4479_v11 = vld [vmem:[#allocation19 + $0x90] ss:$8 sps:$4 sm:$0xff]  }
 0x443   :  { %2922 = vmatpush2.bf16.msra.mxu0 %v4536_v3 }
 0x444   :  { %2302 = vmatmul.mubr.bf16.vlgmr.msra.gmra.mxu1 %v5168_v53  ;;  %v4454_v53 = vld [vmem:[#allocation19 + $0x24] ss:$8 sps:$4 sm:$0xff]   ;;  %2923 = vmatprep.subr.bf16.mxu0 %v4541_v5 }
 0x445   :  { %2861 = vmatpush1.bf16.msra.mxu1 %v4437_v15  ;;  %2892 = vmatprep.mubr.bf16.mxu1 %v2364_v17  ;;  %v4547_v15 = vld [vmem:[#allocation19 + $0x1b4] ss:$8 sps:$4 sm:$0xff]  }
 0x446   :  { %2862 = vmatprep.subr.bf16.mxu1 %v4442_v16  ;;  %v4482_v16 = vld [vmem:[#allocation19 + $0x80] ss:$8 sps:$4 sm:$0xff]   ;;  %v4487_v17 = vld [vmem:[#allocation19 + $0x274] ss:$8 sps:$4 sm:$0xff]  }
 0x447   :  { %2924 = vmatpush2.bf16.msra.mxu0 %v4539_v8  ;;  %v1800_v8 = vrot.slane %v5456_v50, %v5177_v4 }
 0x448   :  { %2925 = vmatprep.subr.bf16.mxu0 %v4544_v10  ;;  %v1796_v10 = vrot.slane %v5456_v50, %v5150_v29  ;;  %v4562_v29 = vld [vmem:[%s5709_s15 + $0x64] ss:$8 sps:$4 sm:$0xff]   ;;  %v4560_v50 = vld [vmem:[%s5709_s15 + $0x60] ss:$8 sps:$4 sm:$0xff]  }
 0x449   :  { %2863 = vmatpush1.bf16.msra.mxu1 %v4440_v18  ;;  %v4545_v18 = vld [vmem:[#allocation19 + $0x1b0] ss:$8 sps:$4 sm:$0xff]  }
 0x44a   :  { %2864 = vmatprep.subr.bf16.mxu1 %v4445_v19  ;;  %v4485_v19 = vld [vmem:[#allocation19 + $0x270] ss:$8 sps:$4 sm:$0xff]  }
 0x44b   :  { %2926 = vmatpush2.bf16.msra.mxu0 %v4542_v14 }
 0x44c   :  { %2927 = vmatprep.subr.bf16.mxu0 %v4547_v15 }
 0x44d   :  { %2865 = vmatpush1.bf16.msra.mxu1 %v4443_v20  ;;  %v4490_v20 = vld [vmem:[#allocation19 + $0x264] ss:$8 sps:$4 sm:$0xff]  }
 0x44e   :  { %2866 = vmatprep.subr.bf16.mxu1 %v4448_v21  ;;  %v4550_v21 = vld [vmem:[#allocation19 + $0x1a4] ss:$8 sps:$4 sm:$0xff]  }
 0x44f   :  { %2928 = vmatpush2.bf16.msra.mxu0 %v4545_v18 }
 0x450   :  { %2929 = vmatprep.subr.bf16.mxu0 %v4550_v21 }
 0x451   :  { %2867 = vmatpush1.bf16.msra.mxu1 %v4446_v22  ;;  %v4488_v22 = vld [vmem:[#allocation19 + $0x260] ss:$8 sps:$4 sm:$0xff]  }
 0x452   :  { %2868 = vmatprep.subr.bf16.mxu1 %v4451_v23  ;;  %v4548_v23 = vld [vmem:[#allocation19 + $0x1a0] ss:$8 sps:$4 sm:$0xff]  }
 0x453   :  { %2930 = vmatpush2.bf16.msra.mxu0 %v4548_v23 }
 0x454   :  { %2931 = vmatprep.subr.bf16.mxu0 %v4553_v26  ;;  %v4563_v26 = vld [vmem:[%s5709_s15 + $0x50] ss:$8 sps:$4 sm:$0xff]  }
 0x455   :  { %2869 = vmatpush1.bf16.msra.mxu1 %v4449_v25  ;;  %v4031_v25 = vpop.f32.mrf.mxu0 }
 0x456   :  { %2870 = vmatprep.subr.bf16.mxu1 %v4454_v53  ;;  %v4551_v53 = vld [vmem:[#allocation19 + $0x190] ss:$8 sps:$4 sm:$0xff]  }
 0x457   :  { %v4032_v52 = vpop.f32.mrf.mxu0  ;;  %2932 = vmatpush2.bf16.msra.mxu0 %v4551_v53  ;;  %v4566_v53 = vld [vmem:[%s5709_s15 + $0x40] ss:$8 sps:$4 sm:$0xff]  }
 0x459   :  { %2871 = vmatpush1.bf16.msra.mxu1 %v4452_v30  ;;  %v4494_v30 = vld [vmem:[#allocation19 + $0x240] ss:$8 sps:$4 sm:$0xff]   ;;  %v4034_v36 = vpop.f32.mrf.mxu0 }
 0x45a   :  { %2872 = vmatprep.subr.bf16.mxu1 %v4457_v34  ;;  %v4554_v34 = vld [vmem:[#allocation19 + $0x180] ss:$8 sps:$4 sm:$0xff]  }
 0x45b   :  { %v4035_v40 = vpop.f32.mrf.mxu0 }
 0x45d   :  { %2873 = vmatpush1.bf16.msra.mxu1 %v4455_v37  ;;  %v4497_v37 = vld [vmem:[#allocation19 + $0x230] ss:$8 sps:$4 sm:$0xff]  }
 0x45e   :  { %2874 = vmatprep.subr.bf16.mxu1 %v4460_v38  ;;  %v4502_v38 = vld [vmem:[#allocation19 + $0x224] ss:$8 sps:$4 sm:$0xff]  }
 0x461   :  { %2875 = vmatpush1.bf16.msra.mxu1 %v4458_v42  ;;  %v4500_v42 = vld [vmem:[#allocation19 + $0x220] ss:$8 sps:$4 sm:$0xff]  }
 0x462   :  { %2876 = vmatprep.subr.bf16.mxu1 %v4463_v43  ;;  %v4036_v43 = vadd.f32 %v4035_v40, %v4034_v36  ;;  %v4580_v36 = vld [vmem:[%s5709_s15 + $0x4] ss:$8 sps:$4 sm:$0xff]   ;;  %v4581_v40 = vld [vmem:[%s5709_s15 + $0xf0] ss:$8 sps:$4 sm:$0xff]  }
 0x464   :  { %v2350_v48 = vadd.f32 %v4036_v43, %v1804_v45  ;;  %v4589_v43 = vld [vmem:[%s5709_s15 + $0xd4] ss:$8 sps:$4 sm:$0xff]  }
 0x465   :  { %2877 = vmatpush2.bf16.msra.mxu1 %v4461_v46  ;;  %v4033_v46 = vadd.f32 %v4032_v52, %v4031_v25  ;;  %v4565_v25 = vld [vmem:[%s5709_s15 + $0x54] ss:$8 sps:$4 sm:$0xff]   ;;  %v4569_v52 = vld [vmem:[%s5709_s15 + $0x30] ss:$8 sps:$4 sm:$0xff]  }
 0x466   :  { %2878 = vmatprep.subr.bf16.mxu1 %v4466_v47  ;;  %v4503_v47 = vld [vmem:[#allocation19 + $0x210] ss:$8 sps:$4 sm:$0xff]   ;;  %v2362_v54 = vmax.f32 %v2350_v48, 0.0  ;;  %v4593_v48 = vld [vmem:[%s5709_s15 + $0xb0] ss:$8 sps:$4 sm:$0xff]  }
 0x469   :  { %2879 = vmatpush2.bf16.msra.mxu1 %v4464_v39  ;;  %v2347_v39 = vadd.f32 %v4033_v46, %v1804_v45  ;;  %v4592_v45 = vld [vmem:[%s5709_s15 + $0xc4] ss:$8 sps:$4 sm:$0xff]   ;;  %v4590_v46 = vld [vmem:[%s5709_s15 + $0xc0] ss:$8 sps:$4 sm:$0xff]  }
 0x46a   :  { %2880 = vmatprep.subr.bf16.mxu1 %v4469_v51  ;;  %v4506_v51 = vld [vmem:[#allocation19 + $0x200] ss:$8 sps:$4 sm:$0xff]  }
 0x46b   :  { %v2357_v55 = vmax.f32 %v2347_v39, 0.0  ;;  %v4596_v39 = vld [vmem:[%s5709_s15 + $0xa0] ss:$8 sps:$4 sm:$0xff]  }
 0x46d   :  { %2881 = vmatpush2.bf16.msra.mxu1 %v4467_v56  ;;  %v2367_v28 = vpack.c.bf16 %v2362_v54, %v2357_v55  ;;  %v4599_v54 = vld [vmem:[%s5709_s15 + $0x90] ss:$8 sps:$4 sm:$0xff]   ;;  %v4604_v55 = vld [vmem:[%s5709_s15 + $0x84] ss:$8 sps:$4 sm:$0xff]  }
 0x46e   :  { %2882 = vmatprep.subr.bf16.mxu1 %v4472_v57 }
 0x471   :  { %2883 = vmatpush2.bf16.msra.mxu1 %v4470_v60 }
 0x472   :  { %2884 = vmatprep.subr.bf16.mxu1 %v4475_v61 }
 0x475   :  { %2885 = vmatpush2.bf16.msra.mxu1 %v4473_v1 }
 0x476   :  { %2886 = vmatprep.subr.bf16.mxu1 %v4478_v2 }
 0x479   :  { %2887 = vmatpush2.bf16.msra.mxu1 %v4476_v6  ;;  %v4559_v6 = vld [vmem:[%s5709_s15 + $0x74] ss:$8 sps:$4 sm:$0xff]  }
 0x47a   :  { %2888 = vmatprep.subr.bf16.mxu1 %v4481_v7 }
 0x47d   :  { %2889 = vmatpush2.bf16.msra.mxu1 %v4479_v11 }
 0x47e   :  { %2890 = vmatprep.subr.bf16.mxu1 %v4484_v13 }
 0x481   :  { %2891 = vmatpush2.bf16.msra.mxu1 %v4482_v16 }
 0x482   :  { %2946 = vmatprep.subr.bf16.mxu1 %v4487_v17 }
 0x484   :  { %2893 = vmatmul.mubr.bf16.vlgmr.msra.gmra.mxu1 %v5480_v9  ;;  %v4556_v9 = vld [vmem:[#allocation19 + $0x184] ss:$8 sps:$4 sm:$0xff]  }
 0x485   :  { %2947 = vmatpush1.bf16.msra.mxu1 %v4485_v19  ;;  %2978 = vmatprep.mubr.bf16.mxu1 %v4963_v12 }
 0x486   :  { %2948 = vmatprep.subr.bf16.mxu1 %v4490_v20  ;;  %2933 = vmatprep.subr.bf16.mxu0 %v4556_v9  ;;  %v4574_v9 = vld [vmem:[%s5709_s15 + $0x24] ss:$8 sps:$4 sm:$0xff]  }
 0x487   :  { %2934 = vmatpush2.bf16.msra.mxu0 %v4554_v34  ;;  %v4577_v34 = vld [vmem:[%s5709_s15 + $0x14] ss:$8 sps:$4 sm:$0xff]  }
 0x488   :  { %3199 = vmatprep.subr.bf16.mxu0 %v4559_v6 }
 0x489   :  { %2949 = vmatpush1.bf16.msra.mxu1 %v4488_v22 }
 0x48a   :  { %2950 = vmatprep.subr.bf16.mxu1 %v4493_v24  ;;  %v4557_v24 = vld [vmem:[%s5709_s15 + $0x70] ss:$8 sps:$4 sm:$0xff]  }
 0x48d   :  { %2951 = vmatpush1.bf16.msra.mxu1 %v4491_v27  ;;  %v4568_v27 = vld [vmem:[%s5709_s15 + $0x44] ss:$8 sps:$4 sm:$0xff]  }
 0x48e   :  { %2952 = vmatprep.subr.bf16.mxu1 %v4496_v33  ;;  %v4571_v33 = vld [vmem:[%s5709_s15 + $0x34] ss:$8 sps:$4 sm:$0xff]  }
 0x491   :  { %2953 = vmatpush1.bf16.msra.mxu1 %v4494_v30  ;;  %v4572_v30 = vld [vmem:[%s5709_s15 + $0x20] ss:$8 sps:$4 sm:$0xff]  }
 0x492   :  { %2954 = vmatprep.subr.bf16.mxu1 %v4499_v35  ;;  %v4575_v35 = vld [vmem:[%s5709_s15 + $0x10] ss:$8 sps:$4 sm:$0xff]  }
 0x495   :  { %2955 = vmatpush1.bf16.msra.mxu1 %v4497_v37  ;;  %v4578_v37 = vld [vmem:[%s5709_s15] ss:$8 sps:$4 sm:$0xff]  }
 0x496   :  { %2956 = vmatprep.subr.bf16.mxu1 %v4502_v38  ;;  %v4583_v38 = vld [vmem:[%s5709_s15 + $0xf4] ss:$8 sps:$4 sm:$0xff]  }
 0x499   :  { %2957 = vmatpush1.bf16.msra.mxu1 %v4500_v42  ;;  %v4584_v42 = vld [vmem:[%s5709_s15 + $0xe0] ss:$8 sps:$4 sm:$0xff]  }
 0x49a   :  { %2958 = vmatprep.subr.bf16.mxu1 %v4505_v44  ;;  %v4587_v44 = vld [vmem:[%s5709_s15 + $0xd0] ss:$8 sps:$4 sm:$0xff]  }
 0x49d   :  { %2959 = vmatpush1.bf16.msra.mxu1 %v4503_v47  ;;  %v4595_v47 = vld [vmem:[%s5709_s15 + $0xb4] ss:$8 sps:$4 sm:$0xff]  }
 0x49e   :  { %2960 = vmatprep.subr.bf16.mxu1 %v4508_v49  ;;  %v4598_v49 = vld [vmem:[%s5709_s15 + $0xa4] ss:$8 sps:$4 sm:$0xff]  }
 0x4a1   :  { %2961 = vmatpush1.bf16.msra.mxu1 %v4506_v51  ;;  %v4601_v51 = vld [vmem:[%s5709_s15 + $0x94] ss:$8 sps:$4 sm:$0xff]  }
 0x4a2   :  { %3348 = vmatprep.subr.bf16.mxu1 %v4963_v12 }
 0x4a4   :  { %2979 = vmatmul.mubr.bf16.vlgmr.msra.gmra.mxu1 %v2367_v28  ;;  %v4602_v28 = vld [vmem:[%s5709_s15 + $0x80] ss:$8 sps:$4 sm:$0xff]  }
 0x4c4   :  { %v4009_v56 = vpop.f32.mrf.mxu1 }
 0x4c6   :  { %v4010_v57 = vpop.f32.mrf.mxu1 }
 0x4c7   :  { %v4011_v58 = vadd.f32 %v4010_v57, %v4009_v56  ;;  %v4609_v56 = vld [vmem:[%s5712_s18 + $0x38] sm:$0xff]   ;;  %v4610_v57 = vld [vmem:[%s5712_s18 + $0x30] sm:$0xff]  }
 0x4c8   :  { %v4012_v60 = vpop.f32.mrf.mxu1  ;;  %3349 = vmatpush1.bf16.msra.mxu1 %v4609_v56 }
 0x4c9   :  { %v1670_v62 = vadd.f32 %v4011_v58, %v3756_v59  ;;  %3350 = vmatprep.subr.bf16.mxu1 %v4963_v12  ;;  %v4611_v58 = vld [vmem:[%s5712_s18 + $0x28] sm:$0xff]  }
 0x4ca   :  { %v4013_v61 = vpop.f32.mrf.mxu1 }
 0x4cb   :  { %v4014_v63 = vadd.f32 %v4013_v61, %v4012_v60  ;;  %v1676_v2 = vmax.f32 %v1670_v62, 0.0  ;;  %v4613_v60 = vld [vmem:[%s5712_s18 + $0x18] sm:$0xff]   ;;  %v4614_v61 = vld [vmem:[%s5712_s18 + $0x10] sm:$0xff]   ;;  %v4615_v62 = vld [vmem:[%s5712_s18 + $0x8] sm:$0xff]  }
 0x4cc   :  { %3351 = vmatpush1.bf16.msra.mxu1 %v4610_v57 }
 0x4cd   :  { %v1673_v1 = vadd.f32 %v4014_v63, %v3756_v59  ;;  %3352 = vmatprep.subr.bf16.mxu1 %v4963_v12  ;;  %v4612_v59 = vld [vmem:[%s5712_s18 + $0x20] sm:$0xff]  }
 0x4ce   :  { %v4616_v63 = vld [vmem:[%s5712_s18] sm:$0xff]  }
 0x4cf   :  { %v1677_v3 = vmax.f32 %v1673_v1, 0.0  ;;  %v4617_v1 = vld [vmem:[%s5712_s18 + $0x58] sm:$0xff]  }
 0x4d0   :  { %3353 = vmatpush1.bf16.msra.mxu1 %v4611_v58 }
 0x4d1   :  { %v5491_v5 = vpack.c.bf16 %v1677_v3, %v1676_v2  ;;  %3354 = vmatprep.subr.bf16.mxu1 %v4963_v12 }
 0x4d4   :  { %3355 = vmatpush1.bf16.msra.mxu1 %v4612_v59 }
 0x4d5   :  { %3356 = vmatprep.subr.bf16.mxu1 %v4963_v12 }
 0x4d8   :  { %3357 = vmatpush1.bf16.msra.mxu1 %v4613_v60 }
 0x4d9   :  { %3358 = vmatprep.subr.bf16.mxu1 %v4963_v12 }
 0x4dc   :  { %3359 = vmatpush1.bf16.msra.mxu1 %v4614_v61 }
 0x4dd   :  { %3360 = vmatprep.subr.bf16.mxu1 %v4963_v12 }
 0x4e0   :  { %3361 = vmatpush1.bf16.msra.mxu1 %v4615_v62 }
 0x4e1   :  { %3362 = vmatprep.subr.bf16.mxu1 %v4963_v12 }
 0x4e4   :  { %3363 = vmatpush1.bf16.msra.mxu1 %v4616_v63  ;;  %v4621_v63 = vld [vmem:[%s5714_s20 + $0x8] sm:$0xff]  }
 0x4e5   :  { %3372 = vmatprep.subr.bf16.mxu1 %v4963_v12 }
 0x4e8   :  { %3373 = vmatpush2.bf16.msra.mxu1 %v4617_v1  ;;  %v4622_v1 = vld [vmem:[%s5714_s20] sm:$0xff]  }
 0x4e9   :  { %3374 = vmatprep.subr.bf16.mxu1 %v4963_v12 }
 0x504   :  { %v2303_v7 = vpop.f32.mrf.mxu1 }
 0x505   :  { %v2304_v16 = vadd.f32 %v2303_v7, %v1796_v10 }
 0x506   :  { %v2305_v11 = vpop.f32.mrf.mxu1 }
 0x507   :  { %v2306_v14 = vadd.f32 %v2305_v11, %v1800_v8  ;;  %v2355_v22 = vmax.f32 %v2304_v16, 0.0 }
 0x508   :  { %v2307_v13 = vpop.f32.mrf.mxu1 }
 0x509   :  { %v2308_v15 = vadd.f32 %v2307_v13, %v1796_v10  ;;  %v2356_v20 = vmax.f32 %v2306_v14, 0.0 }
 0x50a   :  { %v2309_v17 = vpop.f32.mrf.mxu1 }
 0x50b   :  { %v2310_v18 = vadd.f32 %v2309_v17, %v1800_v8  ;;  %v2360_v19 = vmax.f32 %v2308_v15, 0.0  ;;  %v2448_v8 = vld [vmem:[#allocation21] sm:$0x3] }
 0x50c   :  { %v2457_v11 = vrot.slane %v2448_v8, %v5155_v31  ;;  %v2453_v13 = vrot.slane %v2448_v8, %v5158_v32 }
 0x50d   :  { %v2361_v21 = vmax.f32 %v2310_v18, 0.0  ;;  %v2365_v4 = vpack.c.bf16 %v2360_v19, %v2355_v22 }
 0x50f   :  { %v2366_v23 = vpack.c.bf16 %v2361_v21, %v2356_v20 }
 0x511   :  { %2935 = vmatprep.mubr.bf16.mxu0 %v2366_v23 }
 0x512   :  { %2936 = vmatmul.mubr.bf16.vlgmr.msra.gmra.mxu0 %v2365_v4 }
 0x513   :  { %3200 = vmatpush1.bf16.msra.mxu0 %v4557_v24 }
 0x514   :  { %3201 = vmatprep.subr.bf16.mxu0 %v4562_v29 }
 0x517   :  { %3202 = vmatpush1.bf16.msra.mxu0 %v4560_v50 }
 0x518   :  { %3203 = vmatprep.subr.bf16.mxu0 %v4565_v25 }
 0x51b   :  { %3204 = vmatpush1.bf16.msra.mxu0 %v4563_v26 }
 0x51c   :  { %3205 = vmatprep.subr.bf16.mxu0 %v4568_v27 }
 0x51f   :  { %3206 = vmatpush1.bf16.msra.mxu0 %v4566_v53 }
 0x520   :  { %3207 = vmatprep.subr.bf16.mxu0 %v4571_v33 }
 0x523   :  { %3208 = vmatpush1.bf16.msra.mxu0 %v4569_v52 }
 0x524   :  { %3209 = vmatprep.subr.bf16.mxu0 %v4574_v9 }
 0x527   :  { %3210 = vmatpush1.bf16.msra.mxu0 %v4572_v30 }
 0x528   :  { %3211 = vmatprep.subr.bf16.mxu0 %v4577_v34 }
 0x52b   :  { %3212 = vmatpush1.bf16.msra.mxu0 %v4575_v35 }
 0x52c   :  { %3213 = vmatprep.subr.bf16.mxu0 %v4580_v36  ;;  %v4605_v36 = vld [vmem:[%s5711_s17 + $0x18] sm:$0xff]  }
 0x52f   :  { %3214 = vmatpush1.bf16.msra.mxu0 %v4578_v37 }
 0x530   :  { %3215 = vmatprep.subr.bf16.mxu0 %v4583_v38  ;;  %v4606_v38 = vld [vmem:[%s5711_s17 + $0x10] sm:$0xff]  }
 0x533   :  { %3216 = vmatpush2.bf16.msra.mxu0 %v4581_v40  ;;  %v4607_v40 = vld [vmem:[%s5711_s17 + $0x8] sm:$0xff]  }
 0x534   :  { %3217 = vmatprep.subr.bf16.mxu0 %v4586_v41  ;;  %v4608_v41 = vld [vmem:[%s5711_s17] sm:$0xff]  }
 0x537   :  { %3218 = vmatpush2.bf16.msra.mxu0 %v4584_v42  ;;  %v4618_v42 = vld [vmem:[%s5712_s18 + $0x50] sm:$0xff]  }
 0x538   :  { %3219 = vmatprep.subr.bf16.mxu0 %v4589_v43  ;;  %3375 = vmatpush2.bf16.msra.mxu1 %v4618_v42  ;;  %v4619_v43 = vld [vmem:[%s5712_s18 + $0x48] sm:$0xff]  }
 0x539   :  { %3376 = vmatprep.subr.bf16.mxu1 %v4963_v12 }
 0x53b   :  { %3220 = vmatpush2.bf16.msra.mxu0 %v4587_v44  ;;  %v3027_v44 = vld [vmem:[#allocation22] sm:$0x3] }
 0x53c   :  { %3221 = vmatprep.subr.bf16.mxu0 %v4592_v45  ;;  %3377 = vmatpush2.bf16.msra.mxu1 %v4619_v43 }
 0x53d   :  { %3378 = vmatprep.subr.bf16.mxu1 %v4963_v12 }
 0x53f   :  { %3222 = vmatpush2.bf16.msra.mxu0 %v4590_v46  ;;  %v3036_v46 = vrot.slane %v3027_v44, %v5155_v31 }
 0x540   :  { %3223 = vmatprep.subr.bf16.mxu0 %v4595_v47  ;;  %v3032_v47 = vrot.slane %v3027_v44, %v5158_v32 }
 0x543   :  { %3224 = vmatpush2.bf16.msra.mxu0 %v4593_v48 }
 0x544   :  { %3225 = vmatprep.subr.bf16.mxu0 %v4598_v49  ;;  %v2894_v2 = vpop.f32.mrf.mxu1 }
 0x545   :  { %v2895_v17 = vadd.f32 %v2894_v2, %v2453_v13 }
 0x546   :  { %v2896_v3 = vpop.f32.mrf.mxu1 }
 0x547   :  { %3226 = vmatpush2.bf16.msra.mxu0 %v4596_v39  ;;  %v2897_v16 = vadd.f32 %v2896_v3, %v2457_v11 }
 0x548   :  { %3227 = vmatprep.subr.bf16.mxu0 %v4601_v51  ;;  %v2898_v6 = vpop.f32.mrf.mxu1 }
 0x549   :  { %v2899_v19 = vadd.f32 %v2898_v6, %v2453_v13  ;;  %v3983_v6 = vld [vmem:[#allocation24] ss:$0 sm:$0xff] }
 0x54a   :  { %v2900_v7 = vpop.f32.mrf.mxu1 }
 0x54b   :  { %3228 = vmatpush2.bf16.msra.mxu0 %v4599_v54  ;;  %v2901_v24 = vadd.f32 %v2900_v7, %v2457_v11 }
 0x54c   :  { %3229 = vmatprep.subr.bf16.mxu0 %v4604_v55 }
 0x54f   :  { %3230 = vmatpush2.bf16.msra.mxu0 %v4602_v28 }
 0x550   :  { %4053 = vmatprep.subr.bf16.mxu0 %v4961_v0 }
 0x564   :  { %v2980_v10 = vpop.f32.mrf.mxu1 }
 0x566   :  { %v2982_v14 = vpop.f32.mrf.mxu1 }
 0x568   :  { %v2984_v21 = vpop.f32.mrf.mxu1 }
 0x56a   :  { %v2986_v27 = vpop.f32.mrf.mxu1 }
 0x5d2   :  { %v2937_v15 = vpop.f32.mrf.mxu0 }
 0x5d3   :  { %v2938_v22 = vadd.f32 %v2937_v15, %v2895_v17 }
 0x5d4   :  { %v2939_v18 = vpop.f32.mrf.mxu0 }
 0x5d5   :  { %v2940_v20 = vadd.f32 %v2939_v18, %v2897_v16  ;;  %v2981_v53 = vadd.f32 %v2980_v10, %v2938_v22  ;;  %v3984_v18 = vld [vmem:[%s5715_s21] ss:$0 sm:$0xff] }
 0x5d6   :  { %v2941_v23 = vpop.f32.mrf.mxu0 }
 0x5d7   :  { %v2942_v4 = vadd.f32 %v2941_v23, %v2899_v19  ;;  %v2983_v50 = vadd.f32 %v2982_v14, %v2940_v20  ;;  %v2989_v34 = vmax.f32 %v2981_v53, 0.0 }
 0x5d8   :  { %v2943_v29 = vpop.f32.mrf.mxu0 }
 0x5d9   :  { %v2985_v25 = vadd.f32 %v2984_v21, %v2942_v4  ;;  %v2944_v26 = vadd.f32 %v2943_v29, %v2901_v24  ;;  %v2990_v9 = vmax.f32 %v2983_v50, 0.0 }
 0x5db   :  { %v2987_v33 = vadd.f32 %v2986_v27, %v2944_v26  ;;  %v2991_v52 = vmax.f32 %v2985_v25, 0.0  ;;  %v3988_v25 = vld [vmem:[%s5744_s16] ss:$0 sm:$0xff] }
 0x5dd   :  { %v2992_v30 = vmax.f32 %v2987_v33, 0.0  ;;  %v2993_v37 = vpack.c.bf16 %v2991_v52, %v2989_v34 }
 0x5df   :  { %v2994_v35 = vpack.c.bf16 %v2992_v30, %v2990_v9 }
 0x5e1   :  { %3231 = vmatprep.mubr.bf16.mxu0 %v2994_v35 }
 0x5e2   :  { %3232 = vmatmul.mubr.bf16.vlgmr.msra.gmra.mxu0 %v2993_v37 }
 0x5e3   :  { %4054 = vmatpush3.bf16.msra.mxu0 %v4605_v36  ;;  %4061 = vmatprep.mubr.msk.bf16.mxu0 %vm4962_vm0, %v4961_v0 }
 0x5e4   :  { %4055 = vmatprep.subr.bf16.mxu0 %v4961_v0 }
 0x5e7   :  { %4056 = vmatpush3.bf16.msra.mxu0 %v4606_v38 }
 0x5e8   :  { %4057 = vmatprep.subr.bf16.mxu0 %v4961_v0 }
 0x5eb   :  { %4058 = vmatpush3.bf16.msra.mxu0 %v4607_v40 }
 0x5ec   :  { %4059 = vmatprep.subr.bf16.mxu0 %v4961_v0 }
 0x5ef   :  { %4060 = vmatpush3.bf16.msra.mxu0 %v4608_v41 }
 0x5f0   :  { %4073 = vmatprep.subr.bf16.mxu0 %v4961_v0 }
 0x5f2   :  { %4062 = vmatmul.mubr.msk.bf16.vlgmr.msra.gmra.mxu0 %vm3344_vm4, %v5491_v5  ;;  %v4620_v5 = vld [vmem:[%s5712_s18 + $0x40] sm:$0xff]  }
 0x5f3   :  { %4075 = vmatprep.mubr.msk.bf16.mxu0 %vm4962_vm0, %v4961_v0  ;;  %3379 = vmatpush2.bf16.msra.mxu1 %v4620_v5 }
 0x5f4   :  { %4065 = vmatprep.subr.bf16.mxu1 %v4961_v0 }
 0x6a2   :  { %v3233_v45 = vpop.f32.mrf.mxu0 }
 0x6a3   :  { %v3234_v54 = vadd.f32 %v3233_v45, %v3032_v47 }
 0x6a4   :  { %v3235_v48 = vpop.f32.mrf.mxu0 }
 0x6a5   :  { %v3236_v39 = vadd.f32 %v3235_v48, %v3036_v46  ;;  %v3242_v58 = vmax.f32 %v3234_v54, 0.0 }
 0x6a6   :  { %v3237_v49 = vpop.f32.mrf.mxu0 }
 0x6a7   :  { %v3238_v51 = vadd.f32 %v3237_v49, %v3032_v47  ;;  %v3243_v56 = vmax.f32 %v3236_v39, 0.0 }
 0x6a8   :  { %v3239_v55 = vpop.f32.mrf.mxu0 }
 0x6a9   :  { %v3240_v12 = vadd.f32 %v3239_v55, %v3036_v46  ;;  %v3244_v28 = vmax.f32 %v3238_v51, 0.0 }
 0x6ab   :  { %v3245_v57 = vmax.f32 %v3240_v12, 0.0  ;;  %v3246_v60 = vpack.c.bf16 %v3244_v28, %v3242_v58 }
 0x6ad   :  { %v3247_v59 = vpack.c.bf16 %v3245_v57, %v3243_v56 }
 0x6af   :  { %3977 = vmatprep.mubr.msk.bf16.mxu1 %vm3344_vm4, %v3247_v59 }
 0x6b0   :  { %3381 = vmatmul.mubr.bf16.vlgmr.msra.gmra.mxu1 %v3246_v60 }
 0x6b1   :  { %4069 = vmatprep.mubr.msk.bf16.mxu1 %vm4962_vm0, %v4961_v0  ;;  %4066 = vmatpush3.bf16.msra.mxu1 %v4621_v63 }
 0x6b2   :  { %v3450_v31 = vpop.f32.mrf.mxu0  ;;  %4067 = vmatprep.subr.bf16.mxu1 %v4961_v0  ;;  %v4623_v0 = vld [vmem:[%s5716_s22] sm:$0xff]  }
 0x6b3   :  { %4074 = vmatpush3.bf16.msra.mxu0 %v4623_v0 }
 0x6b4   :  { %v4063_v32 = vpop.f32.mrf.mxu0 }
 0x6b5   :  { %4068 = vmatpush3.bf16.msra.mxu1 %v4622_v1 }
 0x6b6   :  { %v3453_v61 = vpop.f32.mrf.mxu0 }
 0x6b8   :  { %v4064_v62 = vpop.f32.mrf.mxu0 }
 0x770   :  { %v3382_v2 = vpop.f32.mrf.mxu1 }
 0x771   :  { %v3451_v3 = vadd.f32 %v3450_v31, %v3382_v2 }
 0x772   :  { %v3384_v7 = vpop.f32.mrf.mxu1 }
 0x773   :  { %v3464_v10 = vadd.f32 %v3983_v6, %v3451_v3 }
 0x774   :  { %v3385_v8 = vpop.f32.mrf.mxu1 }
 0x775   :  { %v3454_v11 = vadd.f32 %v3453_v61, %v3385_v8  ;;  %v3466_v15 = vmax.f32 %v3464_v10, 0.0 }
 0x776   :  { %v3387_v13 = vpop.f32.mrf.mxu1 }
 0x777   :  { %v3465_v14 = vadd.f32 %v3983_v6, %v3454_v11 }
 0x779   :  { %v3467_v16 = vmax.f32 %v3465_v14, 0.0 }
 0x77b   :  { %v3468_v17 = vpack.c.bf16 %v3467_v16, %v3466_v15 }
 0x77d   :  { %4070 = vmatmul.mubr.msk.bf16.vlgmr.msra.gmra.mxu1 %vm406_vm3, %v3468_v17 }
 0x83d   :  { %v3529_v19 = vpop.f32.mrf.mxu1 }
 0x83e   :  { %v3530_v21 = vadd.f32 %v3984_v18, %v3529_v19 }
 0x83f   :  { %v4071_v20 = vpop.f32.mrf.mxu1 }
 0x840   :  { %v3536_v4 = vmax.f32 %v3530_v21, 0.0 }
 0x841   :  { %v3532_v22 = vpop.f32.mrf.mxu1 }
 0x842   :  { %v3533_v23 = vadd.f32 %v3984_v18, %v3532_v22 }
 0x843   :  { %v4072_v24 = vpop.f32.mrf.mxu1 }
 0x844   :  { %v3537_v29 = vmax.f32 %v3533_v23, 0.0 }
 0x846   :  { %v3538_v50 = vpack.c.bf16 %v3537_v29, %v3536_v4 }
 0x848   :  { %4076 = vmatmul.mubr.msk.bf16.vlgmr.msra.gmra.mxu0 %vm3554_vm5, %v3538_v50 }
 0x908   :  { %v3592_v26 = vpop.f32.mrf.mxu0 }
 0x909   :  { %v3593_v27 = vadd.f32 %v3988_v25, %v3592_v26 }
 0x90a   :  { %v4077_v53 = vpop.f32.mrf.mxu0 }
 0x90b   :  { %3600 = vst.msk [vmem:[%s5745_s9] sm:$0xff] %vm3599_vm6, %v3593_v27 }
 0x90c   :  { %v3595_v33 = vpop.f32.mrf.mxu0 }
 0x90d   :  { %v3596_v52 = vadd.f32 %v3988_v25, %v3595_v33 }
 0x90e   :  { %v4078_v9 = vpop.f32.mrf.mxu0 }
 0x90f   :  { %3601 = vst.msk [vmem:[%s5745_s9 + $0x8] sm:$0xff] %vm3599_vm6, %v3596_v52 }
 0x910   :  { %3606 = vsyncpa [#allocation3], 1 }
 0x911   :  { %3607 = vsyncpa [#allocation5], 1 }
 0x912   :  { %3608 = vsyncpa [#allocation8], 1 }
 0x913   :  { %3609 = vsyncpa [#allocation11], 1 }
 0x914   :  { %3610 = vsyncpa [#allocation14], 1 }
 0x915   :  { %3611 = vsyncpa [#allocation17], 1 }
 0x916   :  { %3612 = vsyncpa [#allocation20], 1 }
 0x917   :  { %3613 = vsyncpa [#allocation23], 1 }

</bundles_post_ra>
